<compile_context>
chip_gen: v7x
topology: tpu7x:2x2x1
jax: 0.10.0
libtpu: 0.0.40
codegen_flags: <defaults>
</compile_context>

<pallas_src>
import functools

import jax
import jax.numpy as jnp
from jax import lax
from jax.experimental import pallas as pl
from jax.experimental.pallas import tpu as pltpu


# ---------------------------------------------------------------------------
# Tiled linear:  y = x @ W.T + b     (W stored as (N, K); never transposed)
# ---------------------------------------------------------------------------
def _linear_kernel(x_ref, w_ref, b_ref, o_ref, acc_ref):
    @pl.when(pl.program_id(2) == 0)
    def _():
        acc_ref[...] = jnp.zeros_like(acc_ref)

    acc_ref[...] += lax.dot_general(
        x_ref[...], w_ref[...],
        dimension_numbers=(((1,), (1,)), ((), ())),   # contract K of both
        preferred_element_type=jnp.float32)

    @pl.when(pl.program_id(2) == pl.num_programs(2) - 1)
    def _():
        o_ref[...] = (acc_ref[...] + b_ref[...]).astype(o_ref.dtype)


def _pick_tile(dim, candidates):
    for c in candidates:
        if dim >= c and dim % c == 0:
            return c
    return dim  # full dim is always a legal block size


def pallas_linear(x, weight, bias):
    """F.linear: x (M,K), weight (N,K), bias (N,) -> (M,N), tiled/pipelined."""
    M, K = x.shape
    N = weight.shape[0]
    tm = _pick_tile(M, (512, 256, 128, 64, 32, 16, 8))
    tn = _pick_tile(N, (512, 256, 128))
    tk = _pick_tile(K, (512, 256, 128))
    grid = (M // tm, N // tn, K // tk)
    return pl.pallas_call(
        _linear_kernel,
        grid=grid,
        in_specs=[pl.BlockSpec((tm, tk), lambda i, j, k: (i, k)),
                  pl.BlockSpec((tn, tk), lambda i, j, k: (j, k)),
                  pl.BlockSpec((1, tn), lambda i, j, k: (0, j))],
        out_specs=pl.BlockSpec((tm, tn), lambda i, j, k: (i, j)),
        out_shape=jax.ShapeDtypeStruct((M, N), jnp.float32),
        scratch_shapes=[pltpu.VMEM((tm, tn), jnp.float32)],
        compiler_params=pltpu.CompilerParams(
            dimension_semantics=("parallel", "parallel", "arbitrary")),
    )(x.astype(jnp.float32), weight.astype(jnp.float32),
      bias.reshape(1, N).astype(jnp.float32))


# ---------------------------------------------------------------------------
# Attention kernel
# ---------------------------------------------------------------------------
def _softmax_last(x):
    m = jnp.max(x, axis=-1, keepdims=True)
    e = jnp.exp(x - m)
    # reciprocal on the EUP slot instead of a VPU divide
    return e * pl.reciprocal(jnp.sum(e, axis=-1, keepdims=True), approx=True)


def _attn_kernel(q_ref, k_ref, v_ref, triu_ref, triu_t_ref, out_ref, mask_ref):
    _, _, G, Lq, Dh = q_ref.shape          # (4, 1, G, Lq, Dh)
    L = k_ref.shape[3]

    qp = q_ref[...]                        # [global, left, right, local]
    kp = k_ref[...]
    q_g, q_lf, q_rt, q_lc = qp[0, 0], qp[1, 0], qp[2, 0], qp[3, 0]
    k_g, k_lf, k_rt, k_lc = kp[0, 0], kp[1, 0], kp[2, 0], kp[3, 0]
    v = v_ref[...][0]                      # (G, L, Dh)

    # score matmuls: contract last dims directly (no in-kernel transposes).
    # q_g arrives pre-scaled by 0.1/sqrt(Dh), q_lc by 1/sqrt(Dh) (folded into
    # the projection weights), so no extra per-element multiplies here.
    global_w = jnp.einsum('gqd,gkd->gqk', q_g, k_g,
                          preferred_element_type=jnp.float32)
    local_w = jnp.einsum('gqd,gkd->gqk', q_lc, k_lc,
                         preferred_element_type=jnp.float32)
    left_w = jnp.einsum('gqd,gkd->gqk', q_lf, k_lf,
                        preferred_element_type=jnp.float32)
    right_w = jnp.einsum('gqd,gkd->gqk', q_rt, k_rt,
                         preferred_element_type=jnp.float32)

    left_sm = _softmax_last(left_w)        # f32 softmax
    right_sm = _softmax_last(right_w)

    # The four (L,L)x(L,L) mask matmuls dominate FLOPs: bf16 operands
    # (softmax weights and an exact 0/1 triu), f32 accumulation on the MXU.
    ls = left_sm.reshape(G * Lq, L).astype(jnp.bfloat16)
    rs = right_sm.reshape(G * Lq, L).astype(jnp.bfloat16)
    tu = triu_ref[...]                     # bf16 (L, L)
    tt = triu_t_ref[...]                   # bf16 (L, L), precomputed transpose
    left_mask = jnp.dot(ls, tu, preferred_element_type=jnp.float32)
    right_mask = jnp.dot(rs, tt, preferred_element_type=jnp.float32)
    bw_left_mask = jnp.dot(ls, tt, preferred_element_type=jnp.float32)
    bw_right_mask = jnp.dot(rs, tu, preferred_element_type=jnp.float32)
    local_mask = (left_mask * right_mask
                  + bw_left_mask * bw_right_mask).reshape(G, Lq, L)

    # combine, softmax, attend   (0.1*global already folded into global_w)
    attn_w = _softmax_last(global_w + local_w * local_mask)
    # TODO(synk): dropout on attn_w not implemented (module default p=0.0).
    attn = jnp.einsum('gqk,gkd->gqd', attn_w, v,
                      preferred_element_type=jnp.float32)   # (G, Lq, Dh)

    # lane-dense, head-merged store: columns h*Dh + d of the (B, L, E) output
    merged = jnp.concatenate([attn[g] for g in range(G)], axis=-1)
    out_ref[...] = merged[None].astype(out_ref.dtype)

    # consistency mask accumulated in-kernel over the head-group axis
    @pl.when(pl.program_id(2) == 0)
    def _():
        mask_ref[...] = jnp.zeros_like(mask_ref)
    mask_ref[...] += jnp.sum(local_mask, axis=0)[None].astype(mask_ref.dtype)


def _vmem_limit_bytes():
    cap = 64 * 1024 * 1024
    try:
        cap = int(pltpu.get_tpu_info().vmem_capacity_bytes)
    except Exception:
        pass
    # ~96-100 MiB on 128-MiB-VMEM parts (v5e/v6e), ~48 MiB on v7x (64 MiB).
    return int(min(100 * 1024 * 1024, (cap * 3) // 4))


def _pick_attn_tiles(H, L, Dh, budget_bytes):
    # head-group sizes keeping the merged output lane-dense
    g_cands = [g for g in range(H, 0, -1)
               if H % g == 0 and (g == H or (g * Dh) % 128 == 0)]
    if L <= 256:
        lq_cands = [L]
    else:
        lq_cands = [c for c in (256, 128) if L % c == 0] or [L]

    def footprint(g, lq):          # rough per-step live f32 bytes
        return 4 * g * lq * (16 * L + 12 * Dh)

    for g in g_cands:              # prefer all heads, shrink the q tile first
        for lq in lq_cands:
            if footprint(g, lq) <= budget_bytes:
                return g, lq
    return g_cands[-1], lq_cands[-1]


def pallas_attention(q_pack, k_pack, v_heads, triu_bf, triu_t_bf):
    _, B, H, L, Dh = q_pack.shape
    E = H * Dh
    vmem_limit = _vmem_limit_bytes()
    G, Lq = _pick_attn_tiles(H, L, Dh, vmem_limit)
    HG = H // G
    QT = L // Lq

    q_spec = pl.BlockSpec((4, 1, G, Lq, Dh), lambda b, qi, hg: (0, b, hg, qi, 0))
    k_spec = pl.BlockSpec((4, 1, G, L, Dh), lambda b, qi, hg: (0, b, hg, 0, 0))
    v_spec = pl.BlockSpec((1, G, L, Dh), lambda b, qi, hg: (b, hg, 0, 0))
    triu_spec = pl.BlockSpec((L, L), lambda b, qi, hg: (0, 0))

    out_spec = pl.BlockSpec((1, Lq, G * Dh), lambda b, qi, hg: (b, qi, hg))
    mask_spec = pl.BlockSpec((1, Lq, L), lambda b, qi, hg: (b, qi, 0))

    return pl.pallas_call(
        _attn_kernel,
        grid=(B, QT, HG),
        in_specs=[q_spec, k_spec, v_spec, triu_spec, triu_spec],
        out_specs=(out_spec, mask_spec),
        out_shape=(jax.ShapeDtypeStruct((B, L, E), jnp.float32),
                   jax.ShapeDtypeStruct((B, L, L), jnp.float32)),
        compiler_params=pltpu.CompilerParams(
            dimension_semantics=("parallel", "parallel", "arbitrary"),
            vmem_limit_bytes=vmem_limit),
    )(q_pack, k_pack, v_heads, triu_bf, triu_t_bf)


# ---------------------------------------------------------------------------
# Module wrapper (glue in plain JAX)
# ---------------------------------------------------------------------------
NUM_WEIGHTS = 9


def init_params(key, embed_dim, num_heads):
    E = embed_dim
    k1, k2 = jax.random.split(key)
    b_in = (6.0 / (NUM_WEIGHTS * E + E)) ** 0.5     # xavier_uniform_ bounds
    b_out = (6.0 / (E + E)) ** 0.5
    return {
        "num_heads": num_heads,
        "in_proj_weight": jax.random.uniform(
            k1, (NUM_WEIGHTS * E, E), jnp.float32, -b_in, b_in),
        "in_proj_bias": jnp.zeros((NUM_WEIGHTS * E,), jnp.float32),
        "out_proj_weight": jax.random.uniform(
            k2, (E, E), jnp.float32, -b_out, b_out),
        "out_proj_bias": jnp.zeros((E,), jnp.float32),
    }


def learnable_global_local_mha(query, key, value, shape, params):
    L, B, E = query.shape
    H = params["num_heads"]
    Dh = E // H
    scaling = float(Dh) ** -0.5

    W = params["in_proj_weight"]        # (9E, E)
    bias = params["in_proj_bias"]       # (9E,)

    # q-side rows in [global, left, right, local] order.  Fold 0.1/sqrt(Dh)
    # into the global rows and 1/sqrt(Dh) into the local rows, so neither the
    # post-projection scaling nor the in-kernel 0.1*global multiply is needed.
    g_scale = 0.1 * scaling
    q_W = jnp.concatenate([W[0:E] * g_scale, W[3 * E:4 * E], W[5 * E:6 * E],
                           W[7 * E:8 * E] * scaling], axis=0)
    q_b = jnp.concatenate([bias[0:E] * g_scale, bias[3 * E:4 * E],
                           bias[5 * E:6 * E], bias[7 * E:8 * E] * scaling])
    # k-side rows: [global, left, right, local]
    k_W = jnp.concatenate([W[E:2 * E], W[4 * E:5 * E],
                           W[6 * E:7 * E], W[8 * E:9 * E]], axis=0)
    k_b = jnp.concatenate([bias[E:2 * E], bias[4 * E:5 * E],
                           bias[6 * E:7 * E], bias[8 * E:9 * E]])
    v_W = W[2 * E:3 * E]
    v_b = bias[2 * E:3 * E]

    q_flat = query.reshape(L * B, E)
    k_flat = key.reshape(L * B, E)
    v_flat = value.reshape(L * B, E)

    q_all = pallas_linear(q_flat, q_W, q_b)     # (L*B, 4E)
    k_all = pallas_linear(k_flat, k_W, k_b)     # (L*B, 4E)
    v_proj = pallas_linear(v_flat, v_W, v_b)    # (L*B, E)

    # pack per-head tensors: q/k -> (4, B, H, L, Dh), v -> (B, H, L, Dh)
    q_pack = q_all.reshape(L, B, 4, H, Dh).transpose(2, 1, 3, 0, 4)
    k_pack = k_all.reshape(L, B, 4, H, Dh).transpose(2, 1, 3, 0, 4)
    v_heads = v_proj.reshape(L, B, H, Dh).transpose(1, 2, 0, 3)

    # triu masks: built once, pre-transposed, bf16 (0/1 values are exact)
    s0, s1 = shape
    triu = jnp.triu(jnp.ones((L, L), jnp.float32))
    mini_triu = jnp.tile(jnp.triu(jnp.ones((s1, s1), jnp.float32)), (s0, s0))
    triu = triu * mini_triu
    triu_bf = triu.astype(jnp.bfloat16)
    triu_t_bf = triu.T.astype(jnp.bfloat16)

    attn_heads, mask_sum = pallas_attention(q_pack, k_pack, v_heads,
                                            triu_bf, triu_t_bf)

    # attn_heads: (B, L, E) with heads already merged lane-densely in-kernel
    attn = pallas_linear(attn_heads.reshape(B * L, E),
                         params["out_proj_weight"],
                         params["out_proj_bias"]).reshape(B, L, E)
    attn = attn.transpose(1, 0, 2)                              # (L, B, E)

    # mask_sum: (B, L, L) already summed over heads in-kernel
    consistent_mask = jnp.transpose(mask_sum, (1, 2, 0))[..., None]  # (L,L,B,1)

    return attn, consistent_mask


# ---------------------------------------------------------------------------
if __name__ == "__main__":
    L, B, E, H = 8, 2, 32, 4          # tgt_len, bsz, embed_dim, num_heads
    shape = (2, 4)                    # shape[0] * shape[1] == src_len == 8

    root = jax.random.PRNGKey(0)
    kq, kk, kv, kp = jax.random.split(root, 4)
    query = jax.random.normal(kq, (L, B, E), jnp.float32)
    key = jax.random.normal(kk, (L, B, E), jnp.float32)
    value = jax.random.normal(kv, (L, B, E), jnp.float32)
    params = init_params(kp, E, H)

    fwd = jax.jit(functools.partial(learnable_global_local_mha, shape=shape,
                                    params=params))
    attn, consistent_mask = fwd(query, key, value)
    jax.block_until_ready((attn, consistent_mask))

    assert attn.shape == (L, B, E)
    assert consistent_mask.shape == (L, L, B, 1)
    assert bool(jnp.all(jnp.isfinite(attn)))
    assert bool(jnp.all(jnp.isfinite(consistent_mask)))
    print("KERNEL_OK")
</pallas_src>

<mosaic_0001>
module attributes {stable_mosaic.version = 11 : i64} {
  func.func @_linear_kernel(%arg0: i32, %arg1: i32, %arg2: i32, %arg3: memref<16x32xf32, #tpu.memory_space<vmem>>, %arg4: memref<128x32xf32, #tpu.memory_space<vmem>>, %arg5: memref<1x128xf32, #tpu.memory_space<vmem>>, %arg6: memref<16x128xf32, #tpu.memory_space<vmem>>, %arg7: memref<16x128xf32, #tpu.memory_space<vmem>>) attributes {dimension_semantics = [#tpu.dimension_semantics<parallel>, #tpu.dimension_semantics<parallel>, #tpu.dimension_semantics<arbitrary>], iteration_bounds = array<i64: 1, 1, 1>, scalar_prefetch = 0 : i64, scratch_operands = 1 : i64, tpu.core_type = #tpu.core_type<tc>, window_params = [{transform_indices = @transform_0, window_bounds = array<i64: 16, 32>}, {transform_indices = @transform_1, window_bounds = array<i64: 128, 32>}, {transform_indices = @transform_2, window_bounds = array<i64: 1, 128>}, {transform_indices = @transform_3, window_bounds = array<i64: 16, 128>}]} {
    %c0_i32 = arith.constant 0 : i32
    %0 = arith.cmpi eq, %arg2, %c0_i32 : i32
    %1 = arith.extui %0 : i1 to i32
    %c0_i32_0 = arith.constant 0 : i32
    %2 = arith.cmpi ne, %1, %c0_i32_0 : i32
    scf.if %2 {
      %cst_10 = arith.constant 0.000000e+00 : f32
      %12 = vector.broadcast %cst_10 : f32 to vector<16x128xf32>
      %c0_11 = arith.constant 0 : index
      %c0_12 = arith.constant 0 : index
      %13 = vector.load %arg7[%c0_11, %c0_12] : memref<16x128xf32, #tpu.memory_space<vmem>>, vector<16x128xf32>
      tpu.vector_store %arg7[%c0_11, %c0_12], %12 {strides = array<i32>} : memref<16x128xf32, #tpu.memory_space<vmem>>, vector<16x128xf32>,
    } else {
    }
    %c0 = arith.constant 0 : index
    %c0_1 = arith.constant 0 : index
    %3 = vector.load %arg7[%c0, %c0_1] : memref<16x128xf32, #tpu.memory_space<vmem>>, vector<16x128xf32>
    %c0_2 = arith.constant 0 : index
    %c0_3 = arith.constant 0 : index
    %4 = vector.load %arg3[%c0_2, %c0_3] : memref<16x32xf32, #tpu.memory_space<vmem>>, vector<16x32xf32>
    %c0_4 = arith.constant 0 : index
    %c0_5 = arith.constant 0 : index
    %5 = vector.load %arg4[%c0_4, %c0_5] : memref<128x32xf32, #tpu.memory_space<vmem>>, vector<128x32xf32>
    %cst = arith.constant dense<0.000000e+00> : vector<16x128xf32>
    %6 = tpu.matmul %4, %5, %cst {dimension_numbers = #tpu.dot_dimension_numbers<[1], [1], [0], [0], [0, 0, 1, 0], [], []>} : vector<16x32xf32>, vector<128x32xf32>, vector<16x128xf32> -> vector<16x128xf32>
    %7 = arith.addf %3, %6 : vector<16x128xf32>
    %c0_6 = arith.constant 0 : index
    %c0_7 = arith.constant 0 : index
    %8 = vector.load %arg7[%c0_6, %c0_7] : memref<16x128xf32, #tpu.memory_space<vmem>>, vector<16x128xf32>
    tpu.vector_store %arg7[%c0_6, %c0_7], %7 {strides = array<i32>} : memref<16x128xf32, #tpu.memory_space<vmem>>, vector<16x128xf32>,
    %c0_i32_8 = arith.constant 0 : i32
    %9 = arith.cmpi eq, %arg2, %c0_i32_8 : i32
    %10 = arith.extui %9 : i1 to i32
    %c0_i32_9 = arith.constant 0 : i32
    %11 = arith.cmpi ne, %10, %c0_i32_9 : i32
    scf.if %11 {
      %c0_10 = arith.constant 0 : index
      %c0_11 = arith.constant 0 : index
      %12 = vector.load %arg7[%c0_10, %c0_11] : memref<16x128xf32, #tpu.memory_space<vmem>>, vector<16x128xf32>
      %c0_12 = arith.constant 0 : index
      %c0_13 = arith.constant 0 : index
      %13 = vector.load %arg5[%c0_12, %c0_13] : memref<1x128xf32, #tpu.memory_space<vmem>>, vector<1x128xf32>
      %14 = vector.broadcast %13 : vector<1x128xf32> to vector<16x128xf32>
      %15 = arith.addf %12, %14 : vector<16x128xf32>
      %c0_14 = arith.constant 0 : index
      %c0_15 = arith.constant 0 : index
      %16 = vector.load %arg6[%c0_14, %c0_15] : memref<16x128xf32, #tpu.memory_space<vmem>>, vector<16x128xf32>
      tpu.vector_store %arg6[%c0_14, %c0_15], %15 {strides = array<i32>} : memref<16x128xf32, #tpu.memory_space<vmem>>, vector<16x128xf32>,
    } else {
    }
    return
  }
  func.func @transform_0(%arg0: i32, %arg1: i32, %arg2: i32) -> (i32, i32) {
    %c0_i32 = arith.constant 0 : i32
    return %arg0, %arg2 : i32, i32
  }
  func.func @transform_1(%arg0: i32, %arg1: i32, %arg2: i32) -> (i32, i32) {
    %c0_i32 = arith.constant 0 : i32
    return %arg1, %arg2 : i32, i32
  }
  func.func @transform_2(%arg0: i32, %arg1: i32, %arg2: i32) -> (i32, i32) {
    %c0_i32 = arith.constant 0 : i32
    %c0_i32_0 = arith.constant 0 : i32
    return %c0_i32, %arg1 : i32, i32
  }
  func.func @transform_3(%arg0: i32, %arg1: i32, %arg2: i32) -> (i32, i32) {
    %c0_i32 = arith.constant 0 : i32
    return %arg0, %arg1 : i32, i32
  }
}

module attributes {stable_mosaic.version = 11 : i64} {
  func.func @_linear_kernel(%arg0: i32, %arg1: i32, %arg2: i32, %arg3: memref<16x32xf32, #tpu.memory_space<vmem>>, %arg4: memref<128x32xf32, #tpu.memory_space<vmem>>, %arg5: memref<1x128xf32, #tpu.memory_space<vmem>>, %arg6: memref<16x128xf32, #tpu.memory_space<vmem>>, %arg7: memref<16x128xf32, #tpu.memory_space<vmem>>) attributes {dimension_semantics = [#tpu.dimension_semantics<parallel>, #tpu.dimension_semantics<parallel>, #tpu.dimension_semantics<arbitrary>], iteration_bounds = array<i64: 1, 1, 1>, scalar_prefetch = 0 : i64, scratch_operands = 1 : i64, tpu.core_type = #tpu.core_type<tc>, window_params = [{transform_indices = @transform_0, window_bounds = array<i64: 16, 32>}, {transform_indices = @transform_1, window_bounds = array<i64: 128, 32>}, {transform_indices = @transform_2, window_bounds = array<i64: 1, 128>}, {transform_indices = @transform_3, window_bounds = array<i64: 16, 128>}]} {
    %c0_i32 = arith.constant 0 : i32
    %0 = arith.cmpi eq, %arg2, %c0_i32 : i32
    %1 = arith.extui %0 : i1 to i32
    %c0_i32_0 = arith.constant 0 : i32
    %2 = arith.cmpi ne, %1, %c0_i32_0 : i32
    scf.if %2 {
      %cst_10 = arith.constant 0.000000e+00 : f32
      %12 = vector.broadcast %cst_10 : f32 to vector<16x128xf32>
      %c0_11 = arith.constant 0 : index
      %c0_12 = arith.constant 0 : index
      %13 = vector.load %arg7[%c0_11, %c0_12] : memref<16x128xf32, #tpu.memory_space<vmem>>, vector<16x128xf32>
      tpu.vector_store %arg7[%c0_11, %c0_12], %12 {strides = array<i32>} : memref<16x128xf32, #tpu.memory_space<vmem>>, vector<16x128xf32>,
    } else {
    }
    %c0 = arith.constant 0 : index
    %c0_1 = arith.constant 0 : index
    %3 = vector.load %arg7[%c0, %c0_1] : memref<16x128xf32, #tpu.memory_space<vmem>>, vector<16x128xf32>
    %c0_2 = arith.constant 0 : index
    %c0_3 = arith.constant 0 : index
    %4 = vector.load %arg3[%c0_2, %c0_3] : memref<16x32xf32, #tpu.memory_space<vmem>>, vector<16x32xf32>
    %c0_4 = arith.constant 0 : index
    %c0_5 = arith.constant 0 : index
    %5 = vector.load %arg4[%c0_4, %c0_5] : memref<128x32xf32, #tpu.memory_space<vmem>>, vector<128x32xf32>
    %cst = arith.constant dense<0.000000e+00> : vector<16x128xf32>
    %6 = tpu.matmul %4, %5, %cst {dimension_numbers = #tpu.dot_dimension_numbers<[1], [1], [0], [0], [0, 0, 1, 0], [], []>} : vector<16x32xf32>, vector<128x32xf32>, vector<16x128xf32> -> vector<16x128xf32>
    %7 = arith.addf %3, %6 : vector<16x128xf32>
    %c0_6 = arith.constant 0 : index
    %c0_7 = arith.constant 0 : index
    %8 = vector.load %arg7[%c0_6, %c0_7] : memref<16x128xf32, #tpu.memory_space<vmem>>, vector<16x128xf32>
    tpu.vector_store %arg7[%c0_6, %c0_7], %7 {strides = array<i32>} : memref<16x128xf32, #tpu.memory_space<vmem>>, vector<16x128xf32>,
    %c0_i32_8 = arith.constant 0 : i32
    %9 = arith.cmpi eq, %arg2, %c0_i32_8 : i32
    %10 = arith.extui %9 : i1 to i32
    %c0_i32_9 = arith.constant 0 : i32
    %11 = arith.cmpi ne, %10, %c0_i32_9 : i32
    scf.if %11 {
      %c0_10 = arith.constant 0 : index
      %c0_11 = arith.constant 0 : index
      %12 = vector.load %arg7[%c0_10, %c0_11] : memref<16x128xf32, #tpu.memory_space<vmem>>, vector<16x128xf32>
      %c0_12 = arith.constant 0 : index
      %c0_13 = arith.constant 0 : index
      %13 = vector.load %arg5[%c0_12, %c0_13] : memref<1x128xf32, #tpu.memory_space<vmem>>, vector<1x128xf32>
      %14 = vector.broadcast %13 : vector<1x128xf32> to vector<16x128xf32>
      %15 = arith.addf %12, %14 : vector<16x128xf32>
      %c0_14 = arith.constant 0 : index
      %c0_15 = arith.constant 0 : index
      %16 = vector.load %arg6[%c0_14, %c0_15] : memref<16x128xf32, #tpu.memory_space<vmem>>, vector<16x128xf32>
      tpu.vector_store %arg6[%c0_14, %c0_15], %15 {strides = array<i32>} : memref<16x128xf32, #tpu.memory_space<vmem>>, vector<16x128xf32>,
    } else {
    }
    return
  }
  func.func @transform_0(%arg0: i32, %arg1: i32, %arg2: i32) -> (i32, i32) {
    %c0_i32 = arith.constant 0 : i32
    return %arg0, %arg2 : i32, i32
  }
  func.func @transform_1(%arg0: i32, %arg1: i32, %arg2: i32) -> (i32, i32) {
    %c0_i32 = arith.constant 0 : i32
    return %arg1, %arg2 : i32, i32
  }
  func.func @transform_2(%arg0: i32, %arg1: i32, %arg2: i32) -> (i32, i32) {
    %c0_i32 = arith.constant 0 : i32
    %c0_i32_0 = arith.constant 0 : i32
    return %c0_i32, %arg1 : i32, i32
  }
  func.func @transform_3(%arg0: i32, %arg1: i32, %arg2: i32) -> (i32, i32) {
    %c0_i32 = arith.constant 0 : i32
    return %arg0, %arg1 : i32, i32
  }
}

module attributes {stable_mosaic.version = 11 : i64} {
  func.func @_attn_kernel(%arg0: i32, %arg1: i32, %arg2: i32, %arg3: memref<4x1x4x8x8xf32, #tpu.memory_space<vmem>>, %arg4: memref<4x1x4x8x8xf32, #tpu.memory_space<vmem>>, %arg5: memref<1x4x8x8xf32, #tpu.memory_space<vmem>>, %arg6: memref<8x8xbf16, #tpu.memory_space<vmem>>, %arg7: memref<8x8xbf16, #tpu.memory_space<vmem>>, %arg8: memref<1x8x32xf32, #tpu.memory_space<vmem>>, %arg9: memref<1x8x8xf32, #tpu.memory_space<vmem>>) attributes {dimension_semantics = [#tpu.dimension_semantics<parallel>, #tpu.dimension_semantics<parallel>, #tpu.dimension_semantics<arbitrary>], iteration_bounds = array<i64: 2, 1, 1>, scalar_prefetch = 0 : i64, scratch_operands = 0 : i64, tpu.core_type = #tpu.core_type<tc>, window_params = [{transform_indices = @transform_0, window_bounds = array<i64: 4, 1, 4, 8, 8>}, {transform_indices = @transform_1, window_bounds = array<i64: 4, 1, 4, 8, 8>}, {transform_indices = @transform_2, window_bounds = array<i64: 1, 4, 8, 8>}, {pipeline_mode = #tpu.pipeline_mode<synchronous>, transform_indices = @transform_3, window_bounds = array<i64: 8, 8>}, {pipeline_mode = #tpu.pipeline_mode<synchronous>, transform_indices = @transform_4, window_bounds = array<i64: 8, 8>}, {transform_indices = @transform_5, window_bounds = array<i64: 1, 8, 32>}, {transform_indices = @transform_6, window_bounds = array<i64: 1, 8, 8>}]} {
    %c0 = arith.constant 0 : index
    %c0_0 = arith.constant 0 : index
    %c0_1 = arith.constant 0 : index
    %c0_2 = arith.constant 0 : index
    %c0_3 = arith.constant 0 : index
    %0 = vector.load %arg3[%c0, %c0_0, %c0_1, %c0_2, %c0_3] : memref<4x1x4x8x8xf32, #tpu.memory_space<vmem>>, vector<4x1x4x8x8xf32>
    %c0_4 = arith.constant 0 : index
    %c0_5 = arith.constant 0 : index
    %c0_6 = arith.constant 0 : index
    %c0_7 = arith.constant 0 : index
    %c0_8 = arith.constant 0 : index
    %1 = vector.load %arg4[%c0_4, %c0_5, %c0_6, %c0_7, %c0_8] : memref<4x1x4x8x8xf32, #tpu.memory_space<vmem>>, vector<4x1x4x8x8xf32>
    %2 = vector.extract_strided_slice %0 {offsets = [0, 0, 0, 0, 0], sizes = [1, 1, 4, 8, 8], strides = [1, 1, 1, 1, 1]} : vector<4x1x4x8x8xf32> to vector<1x1x4x8x8xf32>
    %3 = vector.shape_cast %2 : vector<1x1x4x8x8xf32> to vector<4x8x8xf32>
    %4 = vector.extract_strided_slice %0 {offsets = [1, 0, 0, 0, 0], sizes = [1, 1, 4, 8, 8], strides = [1, 1, 1, 1, 1]} : vector<4x1x4x8x8xf32> to vector<1x1x4x8x8xf32>
    %5 = vector.shape_cast %4 : vector<1x1x4x8x8xf32> to vector<4x8x8xf32>
    %6 = vector.extract_strided_slice %0 {offsets = [2, 0, 0, 0, 0], sizes = [1, 1, 4, 8, 8], strides = [1, 1, 1, 1, 1]} : vector<4x1x4x8x8xf32> to vector<1x1x4x8x8xf32>
    %7 = vector.shape_cast %6 : vector<1x1x4x8x8xf32> to vector<4x8x8xf32>
    %8 = vector.extract_strided_slice %0 {offsets = [3, 0, 0, 0, 0], sizes = [1, 1, 4, 8, 8], strides = [1, 1, 1, 1, 1]} : vector<4x1x4x8x8xf32> to vector<1x1x4x8x8xf32>
    %9 = vector.shape_cast %8 : vector<1x1x4x8x8xf32> to vector<4x8x8xf32>
    %10 = vector.extract_strided_slice %1 {offsets = [0, 0, 0, 0, 0], sizes = [1, 1, 4, 8, 8], strides = [1, 1, 1, 1, 1]} : vector<4x1x4x8x8xf32> to vector<1x1x4x8x8xf32>
    %11 = vector.shape_cast %10 : vector<1x1x4x8x8xf32> to vector<4x8x8xf32>
    %12 = vector.extract_strided_slice %1 {offsets = [1, 0, 0, 0, 0], sizes = [1, 1, 4, 8, 8], strides = [1, 1, 1, 1, 1]} : vector<4x1x4x8x8xf32> to vector<1x1x4x8x8xf32>
    %13 = vector.shape_cast %12 : vector<1x1x4x8x8xf32> to vector<4x8x8xf32>
    %14 = vector.extract_strided_slice %1 {offsets = [2, 0, 0, 0, 0], sizes = [1, 1, 4, 8, 8], strides = [1, 1, 1, 1, 1]} : vector<4x1x4x8x8xf32> to vector<1x1x4x8x8xf32>
    %15 = vector.shape_cast %14 : vector<1x1x4x8x8xf32> to vector<4x8x8xf32>
    %16 = vector.extract_strided_slice %1 {offsets = [3, 0, 0, 0, 0], sizes = [1, 1, 4, 8, 8], strides = [1, 1, 1, 1, 1]} : vector<4x1x4x8x8xf32> to vector<1x1x4x8x8xf32>
    %17 = vector.shape_cast %16 : vector<1x1x4x8x8xf32> to vector<4x8x8xf32>
    %c0_9 = arith.constant 0 : index
    %c0_10 = arith.constant 0 : index
    %c0_11 = arith.constant 0 : index
    %c0_12 = arith.constant 0 : index
    %18 = vector.load %arg5[%c0_9, %c0_10, %c0_11, %c0_12] : memref<1x4x8x8xf32, #tpu.memory_space<vmem>>, vector<1x4x8x8xf32>
    %19 = vector.shape_cast %18 : vector<1x4x8x8xf32> to vector<4x8x8xf32>
    "tpu.trace_start"() <{level = 10 : i32, message = "gqd,gkd->gqk"}> : () -> ()
    %cst = arith.constant dense<0.000000e+00> : vector<4x8x8xf32>
    %20 = tpu.matmul %3, %11, %cst {dimension_numbers = #tpu.dot_dimension_numbers<[2], [2], [1], [1], [0, 0, 0, 1, 1, 1], [0], [0]>} : vector<4x8x8xf32>, vector<4x8x8xf32>, vector<4x8x8xf32> -> vector<4x8x8xf32>
    %cst_13 = arith.constant dense<0.000000e+00> : vector<4x8x8xf32>
    %21 = tpu.matmul %9, %17, %cst_13 {dimension_numbers = #tpu.dot_dimension_numbers<[2], [2], [1], [1], [0, 0, 0, 1, 1, 1], [0], [0]>} : vector<4x8x8xf32>, vector<4x8x8xf32>, vector<4x8x8xf32> -> vector<4x8x8xf32>
    %cst_14 = arith.constant dense<0.000000e+00> : vector<4x8x8xf32>
    %22 = tpu.matmul %5, %13, %cst_14 {dimension_numbers = #tpu.dot_dimension_numbers<[2], [2], [1], [1], [0, 0, 0, 1, 1, 1], [0], [0]>} : vector<4x8x8xf32>, vector<4x8x8xf32>, vector<4x8x8xf32> -> vector<4x8x8xf32>
    %cst_15 = arith.constant dense<0.000000e+00> : vector<4x8x8xf32>
    %23 = tpu.matmul %7, %15, %cst_15 {dimension_numbers = #tpu.dot_dimension_numbers<[2], [2], [1], [1], [0, 0, 0, 1, 1, 1], [0], [0]>} : vector<4x8x8xf32>, vector<4x8x8xf32>, vector<4x8x8xf32> -> vector<4x8x8xf32>
    "tpu.trace_stop"() : () -> ()
    %cst_16 = arith.constant dense<0xFF800000> : vector<4x8xf32>
    %24 = vector.multi_reduction <maximumf>, %22, %cst_16 [2] : vector<4x8x8xf32> to vector<4x8xf32>
    %25 = vector.shape_cast %24 : vector<4x8xf32> to vector<4x8x1xf32>
    %26 = vector.broadcast %25 : vector<4x8x1xf32> to vector<4x8x8xf32>
    %27 = arith.subf %22, %26 : vector<4x8x8xf32>
    %28 = math.exp %27 : vector<4x8x8xf32>
    %cst_17 = arith.constant dense<0.000000e+00> : vector<4x8xf32>
    %29 = vector.multi_reduction <add>, %28, %cst_17 [2] : vector<4x8x8xf32> to vector<4x8xf32>
    %30 = vector.shape_cast %29 : vector<4x8xf32> to vector<4x8x1xf32>
    %31 = tpu.reciprocal %30 {approx = true} : vector<4x8x1xf32> -> vector<4x8x1xf32>
    %32 = vector.broadcast %31 : vector<4x8x1xf32> to vector<4x8x8xf32>
    %33 = arith.mulf %28, %32 : vector<4x8x8xf32>
    %cst_18 = arith.constant dense<0xFF800000> : vector<4x8xf32>
    %34 = vector.multi_reduction <maximumf>, %23, %cst_18 [2] : vector<4x8x8xf32> to vector<4x8xf32>
    %35 = vector.shape_cast %34 : vector<4x8xf32> to vector<4x8x1xf32>
    %36 = vector.broadcast %35 : vector<4x8x1xf32> to vector<4x8x8xf32>
    %37 = arith.subf %23, %36 : vector<4x8x8xf32>
    %38 = math.exp %37 : vector<4x8x8xf32>
    %cst_19 = arith.constant dense<0.000000e+00> : vector<4x8xf32>
    %39 = vector.multi_reduction <add>, %38, %cst_19 [2] : vector<4x8x8xf32> to vector<4x8xf32>
    %40 = vector.shape_cast %39 : vector<4x8xf32> to vector<4x8x1xf32>
    %41 = tpu.reciprocal %40 {approx = true} : vector<4x8x1xf32> -> vector<4x8x1xf32>
    %42 = vector.broadcast %41 : vector<4x8x1xf32> to vector<4x8x8xf32>
    %43 = arith.mulf %38, %42 : vector<4x8x8xf32>
    %44 = vector.shape_cast %33 : vector<4x8x8xf32> to vector<32x8xf32>
    %45 = arith.truncf %44 : vector<32x8xf32> to vector<32x8xbf16>
    %46 = vector.shape_cast %43 : vector<4x8x8xf32> to vector<32x8xf32>
    %47 = arith.truncf %46 : vector<32x8xf32> to vector<32x8xbf16>
    %c0_20 = arith.constant 0 : index
    %c0_21 = arith.constant 0 : index
    %48 = vector.load %arg6[%c0_20, %c0_21] : memref<8x8xbf16, #tpu.memory_space<vmem>>, vector<8x8xbf16>
    %c0_22 = arith.constant 0 : index
    %c0_23 = arith.constant 0 : index
    %49 = vector.load %arg7[%c0_22, %c0_23] : memref<8x8xbf16, #tpu.memory_space<vmem>>, vector<8x8xbf16>
    %cst_24 = arith.constant dense<0.000000e+00> : vector<32x8xf32>
    %50 = tpu.matmul %45, %48, %cst_24 {dimension_numbers = #tpu.dot_dimension_numbers<[1], [0], [0], [1], [0, 0, 1, 1], [], []>} : vector<32x8xbf16>, vector<8x8xbf16>, vector<32x8xf32> -> vector<32x8xf32>
    %cst_25 = arith.constant dense<0.000000e+00> : vector<32x8xf32>
    %51 = tpu.matmul %47, %49, %cst_25 {dimension_numbers = #tpu.dot_dimension_numbers<[1], [0], [0], [1], [0, 0, 1, 1], [], []>} : vector<32x8xbf16>, vector<8x8xbf16>, vector<32x8xf32> -> vector<32x8xf32>
    %cst_26 = arith.constant dense<0.000000e+00> : vector<32x8xf32>
    %52 = tpu.matmul %45, %49, %cst_26 {dimension_numbers = #tpu.dot_dimension_numbers<[1], [0], [0], [1], [0, 0, 1, 1], [], []>} : vector<32x8xbf16>, vector<8x8xbf16>, vector<32x8xf32> -> vector<32x8xf32>
    %cst_27 = arith.constant dense<0.000000e+00> : vector<32x8xf32>
    %53 = tpu.matmul %47, %48, %cst_27 {dimension_numbers = #tpu.dot_dimension_numbers<[1], [0], [0], [1], [0, 0, 1, 1], [], []>} : vector<32x8xbf16>, vector<8x8xbf16>, vector<32x8xf32> -> vector<32x8xf32>
    %54 = arith.mulf %50, %51 : vector<32x8xf32>
    %55 = arith.mulf %52, %53 : vector<32x8xf32>
    %56 = arith.addf %54, %55 : vector<32x8xf32>
    %57 = vector.shape_cast %56 : vector<32x8xf32> to vector<4x8x8xf32>
    %58 = arith.mulf %21, %57 : vector<4x8x8xf32>
    %59 = arith.addf %20, %58 : vector<4x8x8xf32>
    %cst_28 = arith.constant dense<0xFF800000> : vector<4x8xf32>
    %60 = vector.multi_reduction <maximumf>, %59, %cst_28 [2] : vector<4x8x8xf32> to vector<4x8xf32>
    %61 = vector.shape_cast %60 : vector<4x8xf32> to vector<4x8x1xf32>
    %62 = vector.broadcast %61 : vector<4x8x1xf32> to vector<4x8x8xf32>
    %63 = arith.subf %59, %62 : vector<4x8x8xf32>
    %64 = math.exp %63 : vector<4x8x8xf32>
    %cst_29 = arith.constant dense<0.000000e+00> : vector<4x8xf32>
    %65 = vector.multi_reduction <add>, %64, %cst_29 [2] : vector<4x8x8xf32> to vector<4x8xf32>
    %66 = vector.shape_cast %65 : vector<4x8xf32> to vector<4x8x1xf32>
    %67 = tpu.reciprocal %66 {approx = true} : vector<4x8x1xf32> -> vector<4x8x1xf32>
    %68 = vector.broadcast %67 : vector<4x8x1xf32> to vector<4x8x8xf32>
    %69 = arith.mulf %64, %68 : vector<4x8x8xf32>
    "tpu.trace_start"() <{level = 10 : i32, message = "gqk,gkd->gqd"}> : () -> ()
    %cst_30 = arith.constant dense<0.000000e+00> : vector<4x8x8xf32>
    %70 = tpu.matmul %69, %19, %cst_30 {dimension_numbers = #tpu.dot_dimension_numbers<[2], [1], [1], [2], [0, 0, 0, 1, 1, 2], [0], [0]>} : vector<4x8x8xf32>, vector<4x8x8xf32>, vector<4x8x8xf32> -> vector<4x8x8xf32>
    "tpu.trace_stop"() : () -> ()
    %71 = vector.extract_strided_slice %70 {offsets = [0, 0, 0], sizes = [1, 8, 8], strides = [1, 1, 1]} : vector<4x8x8xf32> to vector<1x8x8xf32>
    %72 = vector.shape_cast %71 : vector<1x8x8xf32> to vector<8x8xf32>
    %73 = vector.extract_strided_slice %70 {offsets = [1, 0, 0], sizes = [1, 8, 8], strides = [1, 1, 1]} : vector<4x8x8xf32> to vector<1x8x8xf32>
    %74 = vector.shape_cast %73 : vector<1x8x8xf32> to vector<8x8xf32>
    %75 = vector.extract_strided_slice %70 {offsets = [2, 0, 0], sizes = [1, 8, 8], strides = [1, 1, 1]} : vector<4x8x8xf32> to vector<1x8x8xf32>
    %76 = vector.shape_cast %75 : vector<1x8x8xf32> to vector<8x8xf32>
    %77 = vector.extract_strided_slice %70 {offsets = [3, 0, 0], sizes = [1, 8, 8], strides = [1, 1, 1]} : vector<4x8x8xf32> to vector<1x8x8xf32>
    %78 = vector.shape_cast %77 : vector<1x8x8xf32> to vector<8x8xf32>
    %79 = tpu.concatenate %72, %74, %76, %78 in 1 : vector<8x8xf32>, vector<8x8xf32>, vector<8x8xf32>, vector<8x8xf32> -> vector<8x32xf32>
    %80 = vector.shape_cast %79 : vector<8x32xf32> to vector<1x8x32xf32>
    %c0_31 = arith.constant 0 : index
    %c0_32 = arith.constant 0 : index
    %c0_33 = arith.constant 0 : index
    %81 = vector.load %arg8[%c0_31, %c0_32, %c0_33] : memref<1x8x32xf32, #tpu.memory_space<vmem>>, vector<1x8x32xf32>
    tpu.vector_store %arg8[%c0_31, %c0_32, %c0_33], %80 {strides = array<i32>} : memref<1x8x32xf32, #tpu.memory_space<vmem>>, vector<1x8x32xf32>,
    %c0_i32 = arith.constant 0 : i32
    %82 = arith.cmpi eq, %arg2, %c0_i32 : i32
    %83 = arith.extui %82 : i1 to i32
    %c0_i32_34 = arith.constant 0 : i32
    %84 = arith.cmpi ne, %83, %c0_i32_34 : i32
    scf.if %84 {
      %cst_42 = arith.constant 0.000000e+00 : f32
      %90 = vector.broadcast %cst_42 : f32 to vector<1x8x8xf32>
      %c0_43 = arith.constant 0 : index
      %c0_44 = arith.constant 0 : index
      %c0_45 = arith.constant 0 : index
      %91 = vector.load %arg9[%c0_43, %c0_44, %c0_45] : memref<1x8x8xf32, #tpu.memory_space<vmem>>, vector<1x8x8xf32>
      tpu.vector_store %arg9[%c0_43, %c0_44, %c0_45], %90 {strides = array<i32>} : memref<1x8x8xf32, #tpu.memory_space<vmem>>, vector<1x8x8xf32>,
    } else {
    }
    %c0_35 = arith.constant 0 : index
    %c0_36 = arith.constant 0 : index
    %c0_37 = arith.constant 0 : index
    %85 = vector.load %arg9[%c0_35, %c0_36, %c0_37] : memref<1x8x8xf32, #tpu.memory_space<vmem>>, vector<1x8x8xf32>
    %cst_38 = arith.constant dense<0.000000e+00> : vector<8x8xf32>
    %86 = vector.multi_reduction <add>, %57, %cst_38 [0] : vector<4x8x8xf32> to vector<8x8xf32>
    %87 = vector.shape_cast %86 : vector<8x8xf32> to vector<1x8x8xf32>
    %88 = arith.addf %85, %87 : vector<1x8x8xf32>
    %c0_39 = arith.constant 0 : index
    %c0_40 = arith.constant 0 : index
    %c0_41 = arith.constant 0 : index
    %89 = vector.load %arg9[%c0_39, %c0_40, %c0_41] : memref<1x8x8xf32, #tpu.memory_space<vmem>>, vector<1x8x8xf32>
    tpu.vector_store %arg9[%c0_39, %c0_40, %c0_41], %88 {strides = array<i32>} : memref<1x8x8xf32, #tpu.memory_space<vmem>>, vector<1x8x8xf32>,
    return
  }
  func.func @transform_0(%arg0: i32, %arg1: i32, %arg2: i32) -> (i32, i32, i32, i32, i32) {
    %c0_i32 = arith.constant 0 : i32
    %c0_i32_0 = arith.constant 0 : i32
    %c0_i32_1 = arith.constant 0 : i32
    return %c0_i32, %arg0, %arg2, %arg1, %c0_i32_0 : i32, i32, i32, i32, i32
  }
  func.func @transform_1(%arg0: i32, %arg1: i32, %arg2: i32) -> (i32, i32, i32, i32, i32) {
    %c0_i32 = arith.constant 0 : i32
    %c0_i32_0 = arith.constant 0 : i32
    %c0_i32_1 = arith.constant 0 : i32
    %c0_i32_2 = arith.constant 0 : i32
    return %c0_i32, %arg0, %arg2, %c0_i32_0, %c0_i32_1 : i32, i32, i32, i32, i32
  }
  func.func @transform_2(%arg0: i32, %arg1: i32, %arg2: i32) -> (i32, i32, i32, i32) {
    %c0_i32 = arith.constant 0 : i32
    %c0_i32_0 = arith.constant 0 : i32
    %c0_i32_1 = arith.constant 0 : i32
    return %arg0, %arg2, %c0_i32, %c0_i32_0 : i32, i32, i32, i32
  }
  func.func @transform_3(%arg0: i32, %arg1: i32, %arg2: i32) -> (i32, i32) {
    %c0_i32 = arith.constant 0 : i32
    %c0_i32_0 = arith.constant 0 : i32
    %c0_i32_1 = arith.constant 0 : i32
    return %c0_i32, %c0_i32_0 : i32, i32
  }
  func.func @transform_4(%arg0: i32, %arg1: i32, %arg2: i32) -> (i32, i32) {
    %c0_i32 = arith.constant 0 : i32
    %c0_i32_0 = arith.constant 0 : i32
    %c0_i32_1 = arith.constant 0 : i32
    return %c0_i32, %c0_i32_0 : i32, i32
  }
  func.func @transform_5(%arg0: i32, %arg1: i32, %arg2: i32) -> (i32, i32, i32) {
    %c0_i32 = arith.constant 0 : i32
    return %arg0, %arg1, %arg2 : i32, i32, i32
  }
  func.func @transform_6(%arg0: i32, %arg1: i32, %arg2: i32) -> (i32, i32, i32) {
    %c0_i32 = arith.constant 0 : i32
    %c0_i32_0 = arith.constant 0 : i32
    return %arg0, %arg1, %c0_i32 : i32, i32, i32
  }
}

module attributes {stable_mosaic.version = 11 : i64} {
  func.func @_linear_kernel(%arg0: i32, %arg1: i32, %arg2: i32, %arg3: memref<16x32xf32, #tpu.memory_space<vmem>>, %arg4: memref<32x32xf32, #tpu.memory_space<vmem>>, %arg5: memref<1x32xf32, #tpu.memory_space<vmem>>, %arg6: memref<16x32xf32, #tpu.memory_space<vmem>>, %arg7: memref<16x32xf32, #tpu.memory_space<vmem>>) attributes {dimension_semantics = [#tpu.dimension_semantics<parallel>, #tpu.dimension_semantics<parallel>, #tpu.dimension_semantics<arbitrary>], iteration_bounds = array<i64: 1, 1, 1>, scalar_prefetch = 0 : i64, scratch_operands = 1 : i64, tpu.core_type = #tpu.core_type<tc>, window_params = [{transform_indices = @transform_0, window_bounds = array<i64: 16, 32>}, {transform_indices = @transform_1, window_bounds = array<i64: 32, 32>}, {transform_indices = @transform_2, window_bounds = array<i64: 1, 32>}, {transform_indices = @transform_3, window_bounds = array<i64: 16, 32>}]} {
    %c0_i32 = arith.constant 0 : i32
    %0 = arith.cmpi eq, %arg2, %c0_i32 : i32
    %1 = arith.extui %0 : i1 to i32
    %c0_i32_0 = arith.constant 0 : i32
    %2 = arith.cmpi ne, %1, %c0_i32_0 : i32
    scf.if %2 {
      %cst_10 = arith.constant 0.000000e+00 : f32
      %12 = vector.broadcast %cst_10 : f32 to vector<16x32xf32>
      %c0_11 = arith.constant 0 : index
      %c0_12 = arith.constant 0 : index
      %13 = vector.load %arg7[%c0_11, %c0_12] : memref<16x32xf32, #tpu.memory_space<vmem>>, vector<16x32xf32>
      tpu.vector_store %arg7[%c0_11, %c0_12], %12 {strides = array<i32>} : memref<16x32xf32, #tpu.memory_space<vmem>>, vector<16x32xf32>,
    } else {
    }
    %c0 = arith.constant 0 : index
    %c0_1 = arith.constant 0 : index
    %3 = vector.load %arg7[%c0, %c0_1] : memref<16x32xf32, #tpu.memory_space<vmem>>, vector<16x32xf32>
    %c0_2 = arith.constant 0 : index
    %c0_3 = arith.constant 0 : index
    %4 = vector.load %arg3[%c0_2, %c0_3] : memref<16x32xf32, #tpu.memory_space<vmem>>, vector<16x32xf32>
    %c0_4 = arith.constant 0 : index
    %c0_5 = arith.constant 0 : index
    %5 = vector.load %arg4[%c0_4, %c0_5] : memref<32x32xf32, #tpu.memory_space<vmem>>, vector<32x32xf32>
    %cst = arith.constant dense<0.000000e+00> : vector<16x32xf32>
    %6 = tpu.matmul %4, %5, %cst {dimension_numbers = #tpu.dot_dimension_numbers<[1], [1], [0], [0], [0, 0, 1, 0], [], []>} : vector<16x32xf32>, vector<32x32xf32>, vector<16x32xf32> -> vector<16x32xf32>
    %7 = arith.addf %3, %6 : vector<16x32xf32>
    %c0_6 = arith.constant 0 : index
    %c0_7 = arith.constant 0 : index
    %8 = vector.load %arg7[%c0_6, %c0_7] : memref<16x32xf32, #tpu.memory_space<vmem>>, vector<16x32xf32>
    tpu.vector_store %arg7[%c0_6, %c0_7], %7 {strides = array<i32>} : memref<16x32xf32, #tpu.memory_space<vmem>>, vector<16x32xf32>,
    %c0_i32_8 = arith.constant 0 : i32
    %9 = arith.cmpi eq, %arg2, %c0_i32_8 : i32
    %10 = arith.extui %9 : i1 to i32
    %c0_i32_9 = arith.constant 0 : i32
    %11 = arith.cmpi ne, %10, %c0_i32_9 : i32
    scf.if %11 {
      %c0_10 = arith.constant 0 : index
      %c0_11 = arith.constant 0 : index
      %12 = vector.load %arg7[%c0_10, %c0_11] : memref<16x32xf32, #tpu.memory_space<vmem>>, vector<16x32xf32>
      %c0_12 = arith.constant 0 : index
      %c0_13 = arith.constant 0 : index
      %13 = vector.load %arg5[%c0_12, %c0_13] : memref<1x32xf32, #tpu.memory_space<vmem>>, vector<1x32xf32>
      %14 = vector.broadcast %13 : vector<1x32xf32> to vector<16x32xf32>
      %15 = arith.addf %12, %14 : vector<16x32xf32>
      %c0_14 = arith.constant 0 : index
      %c0_15 = arith.constant 0 : index
      %16 = vector.load %arg6[%c0_14, %c0_15] : memref<16x32xf32, #tpu.memory_space<vmem>>, vector<16x32xf32>
      tpu.vector_store %arg6[%c0_14, %c0_15], %15 {strides = array<i32>} : memref<16x32xf32, #tpu.memory_space<vmem>>, vector<16x32xf32>,
    } else {
    }
    return
  }
  func.func @transform_0(%arg0: i32, %arg1: i32, %arg2: i32) -> (i32, i32) {
    %c0_i32 = arith.constant 0 : i32
    return %arg0, %arg2 : i32, i32
  }
  func.func @transform_1(%arg0: i32, %arg1: i32, %arg2: i32) -> (i32, i32) {
    %c0_i32 = arith.constant 0 : i32
    return %arg1, %arg2 : i32, i32
  }
  func.func @transform_2(%arg0: i32, %arg1: i32, %arg2: i32) -> (i32, i32) {
    %c0_i32 = arith.constant 0 : i32
    %c0_i32_0 = arith.constant 0 : i32
    return %c0_i32, %arg1 : i32, i32
  }
  func.func @transform_3(%arg0: i32, %arg1: i32, %arg2: i32) -> (i32, i32) {
    %c0_i32 = arith.constant 0 : i32
    return %arg0, %arg1 : i32, i32
  }
}

</mosaic_0001>

<bundles_post_ra>
// kernel: tile.8
= control target key start
LH: loop header
LB: loop body
LE: loop exit
PB: predicated region body
PF: predicated region fallthrough
CT: control target
= control target key end

     0   :  { %s82_s0 = inlined_call_operand.vmem [shape: f32[4,4], index: 0, kind: input, shape index: {}]   ;;  %s83_s1 = inlined_call_operand.vmem [shape: f32[2,4,2,4], index: 1, kind: output, shape index: {}]  }
   0x1   :  { %v4_v0 = vld [vmem:[%s82_s0] ss:$0 sm:$0xff]  ;;  %v27_v1 = vld [vmem:[%s82_s0 + $0x1] ss:$0 sm:$0xff]  ;;  %v30_v2 = vld [vmem:[%s82_s0 + $0x2] ss:$0 sm:$0xff] }
   0x2   :  { %5 = vst [vmem:[%s83_s1] sm:$0x3] %v4_v0  ;;  %26 = vst [vmem:[%s83_s1 + $0x8] sm:$0x3] %v4_v0  ;;  %v33_v3 = vld [vmem:[%s82_s0 + $0x3] ss:$0 sm:$0xff] }
   0x3   :  { %28 = vst [vmem:[%s83_s1 + $0x2] sm:$0x3] %v27_v1  ;;  %29 = vst [vmem:[%s83_s1 + $0xa] sm:$0x3] %v27_v1 }
   0x4   :  { %31 = vst [vmem:[%s83_s1 + $0x4] sm:$0x3] %v30_v2  ;;  %32 = vst [vmem:[%s83_s1 + $0xc] sm:$0x3] %v30_v2 }
   0x5   :  { %34 = vst [vmem:[%s83_s1 + $0x6] sm:$0x3] %v33_v3  ;;  %35 = vst [vmem:[%s83_s1 + $0xe] sm:$0x3] %v33_v3 }

// kernel: tile.9
= control target key start
LH: loop header
LB: loop body
LE: loop exit
PB: predicated region body
PF: predicated region fallthrough
CT: control target
= control target key end

     0   :  { %vm42_vm0 = vcmask 1047556   ;;  %vm44_vm1 = vcmask 31744   ;;  %vm54_vm2 = vcmask 64544   ;;  %s111_s0 = inlined_call_operand.vmem [shape: f32[2,4,2,4], index: 0, kind: input, shape index: {}]   ;;  %s112_s1 = inlined_call_operand.vmem [shape: f32[8,8], index: 1, kind: output, shape index: {}]  }
   0x1   :  { %v62_v0 = vld [vmem:[%s111_s0 + $0xe] sm:$0x3]  ;;  %v63_v1 = vld [vmem:[%s111_s0 + $0xc] sm:$0x3]  ;;  %v64_v2 = vld [vmem:[%s111_s0 + $0xa] sm:$0x3] }
   0x2   :  { %8 = vst [vmem:[#allocation0 + $0x38] sm:$0x3] %v62_v0  ;;  %13 = vst [vmem:[#allocation0 + $0x30] sm:$0x3] %v63_v1  ;;  %v65_v3 = vld [vmem:[%s111_s0 + $0x8] sm:$0x3] }
   0x3   :  { %18 = vst [vmem:[#allocation0 + $0x28] sm:$0x3] %v64_v2  ;;  %v66_v4 = vld [vmem:[%s111_s0 + $0x6] sm:$0x3]  ;;  %v67_v5 = vld [vmem:[%s111_s0 + $0x4] sm:$0x3] }
   0x4   :  { %23 = vst [vmem:[#allocation0 + $0x20] sm:$0x3] %v65_v3  ;;  %28 = vst [vmem:[#allocation0 + $0x18] sm:$0x3] %v66_v4  ;;  %v68_v6 = vld [vmem:[%s111_s0 + $0x2] sm:$0x3] }
   0x5   :  { %33 = vst [vmem:[#allocation0 + $0x10] sm:$0x3] %v67_v5  ;;  %v38_v7 = vld [vmem:[%s111_s0] sm:$0x3]  ;;  %37 = vst [vmem:[#allocation0 + $0x8] sm:$0x3] %v68_v6 }
   0x6   :  { %39 = vst [vmem:[#allocation0] sm:$0x3] %v38_v7  ;;  %s70_s0 = smov 4  }
   0xb   :  { %v41_v8 = vld [vmem:[#allocation0] ss:$8 sm:$0xf0]   ;;  %v49_v9 = vld [vmem:[#allocation0 + $0x1] ss:$8 sm:$0xf0]  }
   0xd   :  { %v40_v10 = vld [vmem:[#allocation0] ss:$8 sm:$0xf]   ;;  %v47_v11 = vld [vmem:[#allocation0 + $0x1] ss:$8 sm:$0xf]  }
   0xe   :  { %v43_v12 = vsel %vm42_vm0, %v41_v8, %v40_v10  ;;  %v51_v13 = vsel %vm42_vm0, %v49_v9, %v47_v11 }
   0xf   :  { %52 = vrot.lane.b32.xlu0 %v51_v13, %s70_s0  ;;  %45 = vst.msk [vmem:[%s112_s1] sm:$0xff] %vm44_vm1, %v43_v12  }
  0x81   :  { %v53_v14 = vpop.permute.xlu0 %52  }
  0x82   :  { %55 = vst.msk [vmem:[%s112_s1] sm:$0xff] %vm54_vm2, %v53_v14  }

// kernel: learnable_global_local_mha.6
= control target key start
LH: loop header
LB: loop body
LE: loop exit
PB: predicated region body
PF: predicated region fallthrough
CT: control target
= control target key end

     0   :  { %vm40_vm0 = vcmask 261120   ;;  %s437_s1 = inlined_call_operand.vmem [shape: f32[128,32], index: 1, kind: input, shape index: {}]   ;;  %s438_s0 = inlined_call_operand.vmem [shape: f32[16,32], index: 0, kind: input, shape index: {}]   ;;  %s439_s2 = inlined_call_operand.vmem [shape: f32[1,128], index: 2, kind: input, shape index: {}]   ;;  %s440_s3 = inlined_call_operand.vmem [shape: f32[16,128], index: 3, kind: output, shape index: {}]  }
   0x1   :  { %v24_v0 = vld [vmem:[%s437_s1] sm:$0xff]  ;;  %v25_v1 = vld [vmem:[%s437_s1 + $0x8] sm:$0xff]  ;;  %vm342_vm1 = vmpackc.low %vm40_vm0, %vm40_vm0 }
   0x2   :  { %v266_v3 = vpack.c.bf16 %v25_v1, %v24_v0  ;;  %v26_v4 = vld [vmem:[%s437_s1 + $0x10] sm:$0xff]  ;;  %v27_v5 = vld [vmem:[%s437_s1 + $0x18] sm:$0xff]  ;;  %v22_v7 = vld [vmem:[%s438_s0] sm:$0xff] }
   0x3   :  { %v272_v6 = vpack.c.bf16 %v27_v5, %v26_v4  ;;  %v28_v8 = vld [vmem:[%s437_s1 + $0x20] sm:$0xff]  ;;  %v29_v9 = vld [vmem:[%s437_s1 + $0x28] sm:$0xff]  ;;  %263 = vmatprep.mubr.msk.f32.mxu0 %vm40_vm0, %v22_v7  ;;  %v30_v11 = vld [vmem:[%s437_s1 + $0x30] sm:$0xff] }
   0x4   :  { %268 = vmatprep.subr.msk.bf16.mxu0 %vm342_vm1, %v266_v3  ;;  %v278_v10 = vpack.c.bf16 %v29_v9, %v28_v8  ;;  %v31_v12 = vld [vmem:[%s437_s1 + $0x38] sm:$0xff]  ;;  %v32_v14 = vld [vmem:[%s437_s1 + $0x40] sm:$0xff]  ;;  %v33_v15 = vld [vmem:[%s437_s1 + $0x48] sm:$0xff] }
   0x5   :  { %271 = vmatpush3.bf16.xpose.msk.msra.mxu0 %vm342_vm1, %v266_v3  ;;  %v284_v13 = vpack.c.bf16 %v31_v12, %v30_v11  ;;  %v290_v16 = vpack.c.bf16 %v33_v15, %v32_v14  ;;  %v34_v17 = vld [vmem:[%s437_s1 + $0x50] sm:$0xff]  ;;  %v35_v18 = vld [vmem:[%s437_s1 + $0x58] sm:$0xff]  ;;  %v36_v20 = vld [vmem:[%s437_s1 + $0x60] sm:$0xff] }
   0x6   :  { %274 = vmatprep.subr.msk.bf16.mxu0 %vm342_vm1, %v272_v6  ;;  %v296_v19 = vpack.c.bf16 %v35_v18, %v34_v17  ;;  %v37_v21 = vld [vmem:[%s437_s1 + $0x68] sm:$0xff]  ;;  %v38_v23 = vld [vmem:[%s437_s1 + $0x70] sm:$0xff]  ;;  %v39_v24 = vld [vmem:[%s437_s1 + $0x78] sm:$0xff] }
   0x7   :  { %v302_v22 = vpack.c.bf16 %v37_v21, %v36_v20  ;;  %v308_v25 = vpack.c.bf16 %v39_v24, %v38_v23  ;;  %v23_v26 = vld [vmem:[%s438_s0 + $0x8] sm:$0xff]  ;;  %v212_v27 = vld [vmem:[%s439_s2] ss:$0 sm:$0xff] }
   0xd   :  { %277 = vmatpush3.bf16.xpose.msk.msra.mxu0 %vm342_vm1, %v272_v6 }
   0xe   :  { %280 = vmatprep.subr.msk.bf16.mxu0 %vm342_vm1, %v278_v10 }
  0x15   :  { %283 = vmatpush3.bf16.xpose.msk.msra.mxu0 %vm342_vm1, %v278_v10 }
  0x16   :  { %286 = vmatprep.subr.msk.bf16.mxu0 %vm342_vm1, %v284_v13 }
  0x1d   :  { %289 = vmatpush3.bf16.xpose.msk.msra.mxu0 %vm342_vm1, %v284_v13 }
  0x1e   :  { %292 = vmatprep.subr.msk.bf16.mxu0 %vm342_vm1, %v290_v16 }
  0x25   :  { %295 = vmatpush3.bf16.xpose.msk.msra.mxu0 %vm342_vm1, %v290_v16 }
  0x26   :  { %298 = vmatprep.subr.msk.bf16.mxu0 %vm342_vm1, %v296_v19 }
  0x2d   :  { %301 = vmatpush3.bf16.xpose.msk.msra.mxu0 %vm342_vm1, %v296_v19 }
  0x2e   :  { %304 = vmatprep.subr.msk.bf16.mxu0 %vm342_vm1, %v302_v22 }
  0x35   :  { %307 = vmatpush3.bf16.xpose.msk.msra.mxu0 %vm342_vm1, %v302_v22 }
  0x36   :  { %310 = vmatprep.subr.msk.bf16.mxu0 %vm342_vm1, %v308_v25 }
  0x3d   :  { %313 = vmatpush3.bf16.xpose.msk.msra.mxu0 %vm342_vm1, %v308_v25 }
  0x44   :  { %264 = vmatmul.mubr.msk.f32.vlgmr.msra.gmra.mrb[0].mxu0 %vm40_vm0, %v23_v26 }
 0x117   :  { %v265_v28 = vpop.f32.mrb[0].mxu0 }
 0x118   :  { %v187_v29 = vadd.f32 %v265_v28, %v212_v27  ;;  %v161_v30 = vpop.f32.mrb[1].mxu0 }
 0x119   :  { %v186_v31 = vadd.f32 %v212_v27, %v161_v30 }
 0x11a   :  { %189 = vst [vmem:[%s440_s3 + $0x8] sm:$0xff] %v187_v29 }
 0x11b   :  { %188 = vst [vmem:[%s440_s3] sm:$0xff] %v186_v31 }

// kernel: learnable_global_local_mha.5
= control target key start
LH: loop header
LB: loop body
LE: loop exit
PB: predicated region body
PF: predicated region fallthrough
CT: control target
= control target key end

     0   :  { %8 = vsyncpa [#allocation4], 0  ;;  %s493_s0 = inlined_call_operand.hbm [shape: f32[16,32], index: 0, kind: input, shape index: {}]   ;;  %s494_s1 = inlined_call_operand.hbm [shape: f32[128,32], index: 1, kind: input, shape index: {}]   ;;  %s495_s2 = inlined_call_operand.vmem [shape: f32[1,128], index: 2, kind: input, shape index: {}]   ;;  %s496_s3 = inlined_call_operand.vmem [shape: f32[16,128], index: 3, kind: output, shape index: {}]  }
   0x1   :  { %9 = vsyncpa [#allocation6], 0  ;;  %s396_s12 = smov [#allocation3]   ;;  %s348_s16 = scalar_lea.hbm %s493_s0, 256 }
   0x2   :  { %s15_s13 = sshll.u32 %s396_s12, 4  ;;  %p349_p0 = scmp.ne.s32.totalorder %s493_s0, %s348_s16  ;;  %s16_s13 = int_to_ptr.vmem [resolvable:$true] %s15_s13 }
   0x3   :  { %p352_p1 = scmp.lt.u32.totalorder %s348_s16, %s493_s0 }
   0x5   :  { %p354_p2 = pnand %p352_p1, %p349_p0 }
   0x7   :  { %357 = shalt.err (!%p354_p2)
}
   0x8   :  { %s358_s21 = scalar_lea.vmem %s16_s13, 256  ;;  %p363_p4 = scmp.lt.s32.totalorder %s16_s13, %s16_s13 }
   0x9   :  { %p359_p3 = scmp.ne.s32.totalorder %s16_s13, %s358_s21  ;;  %p364_p5 = scmp.lt.s32.totalorder %s358_s21, %s358_s21 }
   0xb   :  { %p365_p6 = por %p364_p5, %p363_p4 }
   0xd   :  { %p366_p7 = pnand %p365_p6, %p359_p3 }
   0xf   :  { %369 = shalt.err (!%p366_p7)
}
  0x10   :  { %s397_s22 = smov 128   ;;  %s398_s23 = smov 8  }
  0x11   :  { %21 = dma.hbm_to_vmem [thread:$0]  %s493_s0, 256, %s16_s13, [#allocation4], %s397_s22, %s397_s22, %s398_s23  }
  0x12   :  { %s399_s26 = smov [#allocation5]   ;;  %s370_s30 = scalar_lea.hbm %s494_s1, 2048 }
  0x13   :  { %s27_s27 = sshll.u32 %s399_s26, 4  ;;  %p371_p8 = scmp.ne.s32.totalorder %s494_s1, %s370_s30  ;;  %s28_s27 = int_to_ptr.vmem [resolvable:$true] %s27_s27 }
  0x14   :  { %p374_p9 = scmp.lt.u32.totalorder %s370_s30, %s494_s1 }
  0x16   :  { %p376_p10 = pnand %p374_p9, %p371_p8 }
  0x18   :  { %379 = shalt.err (!%p376_p10)
}
  0x19   :  { %s380_s8 = scalar_lea.vmem %s28_s27, 2048  ;;  %p385_p12 = scmp.lt.s32.totalorder %s28_s27, %s28_s27 }
  0x1a   :  { %p381_p11 = scmp.ne.s32.totalorder %s28_s27, %s380_s8  ;;  %p386_p13 = scmp.lt.s32.totalorder %s380_s8, %s380_s8 }
  0x1c   :  { %p387_p0 = por %p386_p13, %p385_p12 }
  0x1e   :  { %p388_p1 = pnand %p387_p0, %p381_p11 }
  0x20   :  { %391 = shalt.err (!%p388_p1)
}
  0x21   :  { %33 = dma.hbm_to_vmem [thread:$0]  %s494_s1, 2048, %s28_s27, [#allocation6], %s397_s22, %s397_s22, %s398_s23  }
  0x22   :  { %392 = dma.done.wait [#allocation4], 256  }
  0x23   :  { %393 = vsyncadd [#allocation4], 4294967040 }
  0x24   :  { %394 = dma.done.wait [#allocation6], 2048  }
  0x25   :  { %395 = vsyncadd [#allocation6], 4294965248  ;;  %vm68_vm0 = vcmask 261120   ;;  %v52_v1 = vld [vmem:[#allocation5] sm:$0xff]  ;;  %v53_v2 = vld [vmem:[#allocation5 + $0x8] sm:$0xff] }
  0x26   :  { %vm446_vm1 = vmpackc.low %vm68_vm0, %vm68_vm0  ;;  %v54_v3 = vld [vmem:[#allocation5 + $0x10] sm:$0xff]  ;;  %v296_v4 = vpack.c.bf16 %v53_v2, %v52_v1  ;;  %v55_v5 = vld [vmem:[#allocation5 + $0x18] sm:$0xff] }
  0x27   :  { %v302_v6 = vpack.c.bf16 %v55_v5, %v54_v3  ;;  %v50_v7 = vld [vmem:[#allocation3] sm:$0xff]  ;;  %v56_v8 = vld [vmem:[#allocation5 + $0x20] sm:$0xff]  ;;  %v57_v9 = vld [vmem:[#allocation5 + $0x28] sm:$0xff] }
  0x28   :  { %298 = vmatprep.subr.msk.bf16.mxu0 %vm446_vm1, %v296_v4  ;;  %293 = vmatprep.mubr.msk.f32.mxu0 %vm68_vm0, %v50_v7  ;;  %v308_v10 = vpack.c.bf16 %v57_v9, %v56_v8  ;;  %v58_v11 = vld [vmem:[#allocation5 + $0x30] sm:$0xff]  ;;  %v59_v12 = vld [vmem:[#allocation5 + $0x38] sm:$0xff]  ;;  %v60_v14 = vld [vmem:[#allocation5 + $0x40] sm:$0xff] }
  0x29   :  { %301 = vmatpush3.bf16.xpose.msk.msra.mxu0 %vm446_vm1, %v296_v4  ;;  %v314_v13 = vpack.c.bf16 %v59_v12, %v58_v11  ;;  %v61_v15 = vld [vmem:[#allocation5 + $0x48] sm:$0xff]  ;;  %v62_v17 = vld [vmem:[#allocation5 + $0x50] sm:$0xff]  ;;  %v63_v18 = vld [vmem:[#allocation5 + $0x58] sm:$0xff] }
  0x2a   :  { %304 = vmatprep.subr.msk.bf16.mxu0 %vm446_vm1, %v302_v6  ;;  %v320_v16 = vpack.c.bf16 %v61_v15, %v60_v14  ;;  %v326_v19 = vpack.c.bf16 %v63_v18, %v62_v17  ;;  %v64_v20 = vld [vmem:[#allocation5 + $0x60] sm:$0xff]  ;;  %v65_v21 = vld [vmem:[#allocation5 + $0x68] sm:$0xff]  ;;  %v66_v23 = vld [vmem:[#allocation5 + $0x70] sm:$0xff] }
  0x2b   :  { %v332_v22 = vpack.c.bf16 %v65_v21, %v64_v20  ;;  %v67_v24 = vld [vmem:[#allocation5 + $0x78] sm:$0xff]  ;;  %v242_v27 = vld [vmem:[%s495_s2] ss:$0 sm:$0xff] }
  0x2c   :  { %v338_v25 = vpack.c.bf16 %v67_v24, %v66_v23  ;;  %v51_v26 = vld [vmem:[#allocation3 + $0x8] sm:$0xff] }
  0x31   :  { %307 = vmatpush3.bf16.xpose.msk.msra.mxu0 %vm446_vm1, %v302_v6 }
  0x32   :  { %310 = vmatprep.subr.msk.bf16.mxu0 %vm446_vm1, %v308_v10 }
  0x39   :  { %313 = vmatpush3.bf16.xpose.msk.msra.mxu0 %vm446_vm1, %v308_v10 }
  0x3a   :  { %316 = vmatprep.subr.msk.bf16.mxu0 %vm446_vm1, %v314_v13 }
  0x41   :  { %319 = vmatpush3.bf16.xpose.msk.msra.mxu0 %vm446_vm1, %v314_v13 }
  0x42   :  { %322 = vmatprep.subr.msk.bf16.mxu0 %vm446_vm1, %v320_v16 }
  0x49   :  { %325 = vmatpush3.bf16.xpose.msk.msra.mxu0 %vm446_vm1, %v320_v16 }
  0x4a   :  { %328 = vmatprep.subr.msk.bf16.mxu0 %vm446_vm1, %v326_v19 }
  0x51   :  { %331 = vmatpush3.bf16.xpose.msk.msra.mxu0 %vm446_vm1, %v326_v19 }
  0x52   :  { %334 = vmatprep.subr.msk.bf16.mxu0 %vm446_vm1, %v332_v22 }
  0x59   :  { %337 = vmatpush3.bf16.xpose.msk.msra.mxu0 %vm446_vm1, %v332_v22 }
  0x5a   :  { %340 = vmatprep.subr.msk.bf16.mxu0 %vm446_vm1, %v338_v25 }
  0x61   :  { %343 = vmatpush3.bf16.xpose.msk.msra.mxu0 %vm446_vm1, %v338_v25 }
  0x68   :  { %294 = vmatmul.mubr.msk.f32.vlgmr.msra.gmra.mrb[0].mxu0 %vm68_vm0, %v51_v26 }
 0x13b   :  { %v295_v28 = vpop.f32.mrb[0].mxu0 }
 0x13c   :  { %v215_v29 = vadd.f32 %v295_v28, %v242_v27  ;;  %v189_v30 = vpop.f32.mrb[1].mxu0 }
 0x13d   :  { %v214_v31 = vadd.f32 %v242_v27, %v189_v30 }
 0x13e   :  { %217 = vst [vmem:[%s496_s3 + $0x8] sm:$0xff] %v215_v29 }
 0x13f   :  { %216 = vst [vmem:[%s496_s3] sm:$0xff] %v214_v31 }
 0x140   :  { %222 = vsyncpa [#allocation4], 1 }
 0x141   :  { %223 = vsyncpa [#allocation6], 1 }

// kernel: learnable_global_local_mha.7
= control target key start
LH: loop header
LB: loop body
LE: loop exit
PB: predicated region body
PF: predicated region fallthrough
CT: control target
= control target key end

     0   :  { %vm18_vm0 = vcmask 261120   ;;  %v184_v2 = vmov 0.0   ;;  %s242_s1 = inlined_call_operand.vmem [shape: f32[32,32], index: 1, kind: input, shape index: {}]   ;;  %s243_s0 = inlined_call_operand.vmem [shape: f32[16,32], index: 0, kind: input, shape index: {}]   ;;  %s244_s2 = inlined_call_operand.vmem [shape: f32[1,32], index: 2, kind: input, shape index: {}]   ;;  %s245_s3 = inlined_call_operand.vmem [shape: f32[16,32], index: 3, kind: output, shape index: {}]  }
   0x1   :  { %v25_v0 = vld [vmem:[%s242_s1] sm:$0xff]  ;;  %v26_v1 = vld [vmem:[%s242_s1 + $0x8] sm:$0xff]  ;;  %vm172_vm1 = vmpackc.low %vm18_vm0, %vm18_vm0  ;;  %20 = vst.msk [vmem:[#allocation2 + $0x8] sm:$0xff] %vm18_vm0, %v184_v2 }
   0x2   :  { %19 = vst.msk [vmem:[#allocation2] sm:$0xff] %vm18_vm0, %v184_v2  ;;  %v171_v3 = vpack.c.bf16 %v26_v1, %v25_v0  ;;  %v27_v4 = vld [vmem:[%s242_s1 + $0x10] sm:$0xff]  ;;  %v28_v5 = vld [vmem:[%s242_s1 + $0x18] sm:$0xff]  ;;  %v23_v6 = vld [vmem:[%s243_s0] sm:$0xff] }
   0x3   :  { %v177_v7 = vpack.c.bf16 %v28_v5, %v27_v4  ;;  %168 = vmatprep.mubr.msk.f32.mxu0 %vm18_vm0, %v23_v6  ;;  %v24_v8 = vld [vmem:[%s243_s0 + $0x8] sm:$0xff]  ;;  %v153_v15 = vld [vmem:[%s244_s2] ss:$0 sm:$0xff] }
   0x4   :  { %173 = vmatprep.subr.msk.bf16.mxu0 %vm172_vm1, %v171_v3 }
   0x5   :  { %176 = vmatpush3.bf16.xpose.msk.msra.mxu0 %vm172_vm1, %v171_v3 }
   0x6   :  { %179 = vmatprep.subr.msk.bf16.mxu0 %vm172_vm1, %v177_v7 }
   0x8   :  { %v22_v9 = vld [vmem:[#allocation2 + $0x8] sm:$0xff] }
   0x9   :  { %v21_v10 = vld [vmem:[#allocation2] sm:$0xff] }
   0xd   :  { %182 = vmatpush3.bf16.xpose.msk.msra.mxu0 %vm172_vm1, %v177_v7 }
  0x14   :  { %169 = vmatmul.mubr.msk.f32.vlgmr.msra.gmra.mrb[0].mxu0 %vm18_vm0, %v24_v8 }
  0xe7   :  { %v170_v11 = vpop.f32.mrb[0].mxu0 }
  0xe8   :  { %v124_v12 = vadd.f32 %v170_v11, %v22_v9  ;;  %v114_v13 = vpop.f32.mrb[1].mxu0 }
  0xe9   :  { %v123_v14 = vadd.f32 %v114_v13, %v21_v10 }
  0xea   :  { %126 = vst.msk [vmem:[#allocation2 + $0x8] sm:$0xff] %vm18_vm0, %v124_v12 }
  0xeb   :  { %125 = vst.msk [vmem:[#allocation2] sm:$0xff] %vm18_vm0, %v123_v14 }
  0xf1   :  { %v131_v16 = vld [vmem:[#allocation2 + $0x8] sm:$0xff] }
  0xf2   :  { %v140_v17 = vadd.f32 %v153_v15, %v131_v16  ;;  %v130_v18 = vld [vmem:[#allocation2] sm:$0xff] }
  0xf3   :  { %v139_v19 = vadd.f32 %v153_v15, %v130_v18 }
  0xf4   :  { %142 = vst.msk [vmem:[%s245_s3 + $0x8] sm:$0xff] %vm18_vm0, %v140_v17 }
  0xf5   :  { %141 = vst.msk [vmem:[%s245_s3] sm:$0xff] %vm18_vm0, %v139_v19 }

// kernel: learnable_global_local_mha.8
= control target key start
LH: loop header
LB: loop body
LE: loop exit
PB: predicated region body
PF: predicated region fallthrough
CT: control target
= control target key end

     0   :  { %s3105_s21 = smov 0   ;;  %s3107_s22 = smov 0   ;;  %s3429_s0 = inlined_call_operand.vmem [shape: f32[4,2,4,8,8], index: 0, kind: input, shape index: {}]   ;;  %s3430_s1 = inlined_call_operand.vmem [shape: f32[4,2,4,8,8], index: 1, kind: input, shape index: {}]   ;;  %s3431_s2 = inlined_call_operand.vmem [shape: f32[2,4,8,8], index: 2, kind: input, shape index: {}]   ;;  %s3432_s3 = inlined_call_operand.vmem [shape: bf16[8,8], index: 3, kind: input, shape index: {}]   ;;  %s3433_s4 = inlined_call_operand.vmem [shape: bf16[8,8], index: 4, kind: input, shape index: {}]   ;;  %s3434_s5 = inlined_call_operand.vmem [shape: f32[2,8,32], index: 5, kind: output, shape index: {0}]   ;;  %s3435_s6 = inlined_call_operand.vmem [shape: f32[2,8,8], index: 6, kind: output, shape index: {1}]  }
   0x1   :  { %s3109_s23 = smov 0   ;;  %s3111_s24 = smov 0  }
   0x2   :  { %s3113_s25 = smov 0  }
   0x3 LB: > { %s36_s26 = sadd.s32 1, %s3059_s24  ;;  %p54_p1 = scmp.ne.s32.totalorder %s3051_s22, %s3047_s21  ;;  %s3063_s25 = sphi %s3113_s25, %s17_s25   ;;  %s3059_s24 = sphi %s3111_s24, %s3440_s24   ;;  %s3055_s23 = sphi %s3109_s23, %s3439_s23   ;;  %s3051_s22 = sphi %s3107_s22, %s3438_s22   ;;  %s3047_s21 = sphi %s3105_s21, %s3437_s21  }
   0x4   : > { %p38_p0 = scmp.ge.s32.totalorder %s36_s26, 2  ;;  %p55_p2 = scmp.eq.s32.totalorder %s3063_s25, 0 }
   0x5   : > { %s47_s29 = sadd.s32 1, %s3051_s22  ;;  %p2689_p5 = scmp.ge.s32.totalorder %s3063_s25, 2 }
   0x6   : > { %s3442_s26 = smov (%p38_p0, %s36_s26), 0  ;;  %p3136_p3 = por %p55_p2, %p54_p1 }
   0x7   : > { %s40_s28 = ssub.s32 %s3059_s24, %s3442_s26  ;;  %242 = sbr.rel (%p2689_p5) target bundleno = 38 (0x26), region = 24 }
   0x8   : > { %p45_p4 = scmp.eq.s32.totalorder %s40_s28, 0 }
   0xa   : > { %s3144_s30 = scalar_select %p45_p4, %s3051_s22, %s47_s29  }
   0xe   : > { %245 = sbr.rel (!%p3136_p3) target bundleno = 26 (0x1a), region = 28  ;;  %s247_s7 = sand.u32 (%p3136_p3), 1, %s3051_s22  }
   0xf   : > { %s2749_s8 = sshll.u32 (%p3136_p3), %s3059_s24, 5  ;;  %s2690_s9 = sshll.u32 (%p3136_p3), %s247_s7, 7 }
  0x10   : > { %s3154_s12 = scalar_lea.vmem (%p3136_p3), %s3429_s0, %s2749_s8  ;;  %s249_s13 = scalar_lea.vmem (%p3136_p3), [#allocation2], %s2690_s9 }
  0x11   : > { %v313_v0 = vld [vmem:[%s3154_s12] sm:$0xff] (%p3136_p3)  ;;  %v315_v1 = vld [vmem:[%s3154_s12 + $0x8] sm:$0xff] (%p3136_p3)  ;;  %v317_v2 = vld [vmem:[%s3154_s12 + $0x10] sm:$0xff] (%p3136_p3) }
  0x12   : > { %314 = vst [vmem:[%s249_s13] sm:$0xff] (%p3136_p3), %v313_v0  ;;  %316 = vst [vmem:[%s249_s13 + $0x8] sm:$0xff] (%p3136_p3), %v315_v1  ;;  %v319_v3 = vld [vmem:[%s3154_s12 + $0x18] sm:$0xff] (%p3136_p3)  ;;  %v321_v4 = vld [vmem:[%s3154_s12 + $0x40] sm:$0xff] (%p3136_p3) }
  0x13   : > { %318 = vst [vmem:[%s249_s13 + $0x10] sm:$0xff] (%p3136_p3), %v317_v2  ;;  %v323_v5 = vld [vmem:[%s3154_s12 + $0x48] sm:$0xff] (%p3136_p3)  ;;  %320 = vst [vmem:[%s249_s13 + $0x18] sm:$0xff] (%p3136_p3), %v319_v3  ;;  %v325_v6 = vld [vmem:[%s3154_s12 + $0x50] sm:$0xff] (%p3136_p3) }
  0x14   : > { %322 = vst [vmem:[%s249_s13 + $0x20] sm:$0xff] (%p3136_p3), %v321_v4  ;;  %324 = vst [vmem:[%s249_s13 + $0x28] sm:$0xff] (%p3136_p3), %v323_v5  ;;  %v327_v7 = vld [vmem:[%s3154_s12 + $0x58] sm:$0xff] (%p3136_p3)  ;;  %v329_v8 = vld [vmem:[%s3154_s12 + $0x80] sm:$0xff] (%p3136_p3) }
  0x15   : > { %326 = vst [vmem:[%s249_s13 + $0x30] sm:$0xff] %v325_v6  ;;  %328 = vst [vmem:[%s249_s13 + $0x38] sm:$0xff] %v327_v7  ;;  %v331_v9 = vld [vmem:[%s3154_s12 + $0x88] sm:$0xff]  ;;  %v333_v10 = vld [vmem:[%s3154_s12 + $0x90] sm:$0xff] }
  0x16   : > { %330 = vst [vmem:[%s249_s13 + $0x40] sm:$0xff] %v329_v8  ;;  %v335_v11 = vld [vmem:[%s3154_s12 + $0x98] sm:$0xff]  ;;  %332 = vst [vmem:[%s249_s13 + $0x48] sm:$0xff] %v331_v9  ;;  %v337_v12 = vld [vmem:[%s3154_s12 + $0xc0] sm:$0xff] }
  0x17   : > { %334 = vst [vmem:[%s249_s13 + $0x50] sm:$0xff] %v333_v10  ;;  %336 = vst [vmem:[%s249_s13 + $0x58] sm:$0xff] %v335_v11  ;;  %v339_v13 = vld [vmem:[%s3154_s12 + $0xc8] sm:$0xff]  ;;  %v341_v14 = vld [vmem:[%s3154_s12 + $0xd0] sm:$0xff] }
  0x18   : > { %338 = vst [vmem:[%s249_s13 + $0x60] sm:$0xff] %v337_v12  ;;  %340 = vst [vmem:[%s249_s13 + $0x68] sm:$0xff] %v339_v13  ;;  %v343_v15 = vld [vmem:[%s3154_s12 + $0xd8] sm:$0xff] }
  0x19   : > { %342 = vst [vmem:[%s249_s13 + $0x70] sm:$0xff] %v341_v14  ;;  %344 = vst [vmem:[%s249_s13 + $0x78] sm:$0xff] %v343_v15 }
  0x1a PF: > { %350 = sbr.rel (!%p3136_p3) target bundleno = 38 (0x26), region = 66  ;;  %s352_s14 = sand.u32 (%p3136_p3), 1, %s3051_s22  }
  0x1b   : > { %s2750_s15 = sshll.u32 (%p3136_p3), %s3059_s24, 5  ;;  %s2693_s16 = sshll.u32 (%p3136_p3), %s352_s14, 7 }
  0x1c   : > { %s3179_s19 = scalar_lea.vmem (%p3136_p3), %s3430_s1, %s2750_s15  ;;  %s354_s20 = scalar_lea.vmem (%p3136_p3), [#allocation3], %s2693_s16 }
  0x1d   : > { %v417_v16 = vld [vmem:[%s3179_s19] sm:$0xff] (%p3136_p3)  ;;  %v419_v17 = vld [vmem:[%s3179_s19 + $0x8] sm:$0xff] (%p3136_p3)  ;;  %v421_v18 = vld [vmem:[%s3179_s19 + $0x10] sm:$0xff] (%p3136_p3) }
  0x1e   : > { %418 = vst [vmem:[%s354_s20] sm:$0xff] (%p3136_p3), %v417_v16  ;;  %420 = vst [vmem:[%s354_s20 + $0x8] sm:$0xff] (%p3136_p3), %v419_v17  ;;  %v423_v19 = vld [vmem:[%s3179_s19 + $0x18] sm:$0xff] (%p3136_p3)  ;;  %v425_v20 = vld [vmem:[%s3179_s19 + $0x40] sm:$0xff] (%p3136_p3) }
  0x1f   : > { %422 = vst [vmem:[%s354_s20 + $0x10] sm:$0xff] (%p3136_p3), %v421_v18  ;;  %v427_v21 = vld [vmem:[%s3179_s19 + $0x48] sm:$0xff] (%p3136_p3)  ;;  %424 = vst [vmem:[%s354_s20 + $0x18] sm:$0xff] (%p3136_p3), %v423_v19  ;;  %v429_v22 = vld [vmem:[%s3179_s19 + $0x50] sm:$0xff] (%p3136_p3) }
  0x20   : > { %426 = vst [vmem:[%s354_s20 + $0x20] sm:$0xff] (%p3136_p3), %v425_v20  ;;  %428 = vst [vmem:[%s354_s20 + $0x28] sm:$0xff] (%p3136_p3), %v427_v21  ;;  %v431_v23 = vld [vmem:[%s3179_s19 + $0x58] sm:$0xff] (%p3136_p3)  ;;  %v433_v24 = vld [vmem:[%s3179_s19 + $0x80] sm:$0xff] (%p3136_p3) }
  0x21   : > { %430 = vst [vmem:[%s354_s20 + $0x30] sm:$0xff] %v429_v22  ;;  %432 = vst [vmem:[%s354_s20 + $0x38] sm:$0xff] %v431_v23  ;;  %v435_v25 = vld [vmem:[%s3179_s19 + $0x88] sm:$0xff]  ;;  %v437_v26 = vld [vmem:[%s3179_s19 + $0x90] sm:$0xff] }
  0x22   : > { %434 = vst [vmem:[%s354_s20 + $0x40] sm:$0xff] %v433_v24  ;;  %v439_v27 = vld [vmem:[%s3179_s19 + $0x98] sm:$0xff]  ;;  %436 = vst [vmem:[%s354_s20 + $0x48] sm:$0xff] %v435_v25  ;;  %v441_v28 = vld [vmem:[%s3179_s19 + $0xc0] sm:$0xff] }
  0x23   : > { %438 = vst [vmem:[%s354_s20 + $0x50] sm:$0xff] %v437_v26  ;;  %440 = vst [vmem:[%s354_s20 + $0x58] sm:$0xff] %v439_v27  ;;  %v443_v29 = vld [vmem:[%s3179_s19 + $0xc8] sm:$0xff]  ;;  %v445_v30 = vld [vmem:[%s3179_s19 + $0xd0] sm:$0xff] }
  0x24   : > { %442 = vst [vmem:[%s354_s20 + $0x60] sm:$0xff] %v441_v28  ;;  %444 = vst [vmem:[%s354_s20 + $0x68] sm:$0xff] %v443_v29  ;;  %v447_v31 = vld [vmem:[%s3179_s19 + $0xd8] sm:$0xff] }
  0x25   : > { %446 = vst [vmem:[%s354_s20 + $0x70] sm:$0xff] %v445_v30  ;;  %448 = vst [vmem:[%s354_s20 + $0x78] sm:$0xff] %v447_v31 }
  0x26 PF: > { %p2696_p6 = scmp.ge.s32.totalorder %s3063_s25, 1  ;;  %p466_p7 = scmp.lt.s32.totalorder %s3063_s25, 3 }
  0x28   : > { %p467_p8 = pnand %p2696_p6, %p466_p7 }
  0x29   : > { %s473_s27 = sand.u32 (!%p467_p8), 1, %s3047_s21   ;;  %v3065_v32 = vmov (!%p467_p8), 0.0   ;;  %vm600_vm0 = vcmask (!%p467_p8), 64512   ;;  %vm3066_vm1 = vmmov (!%p467_p8), 0   ;;  %vm1613_vm2 = vcmask (!%p467_p8), 1043456   ;;  %p537_p9 = scmp.lt.s32.totalorder (!%p467_p8), %s3055_s23, 1 }
  0x2a   : > { %470 = sbr.rel (%p467_p8) target bundleno = 1481 (0x5c9), region = 108  ;;  %2804 = vmatprep.subr.mxu0 (!%p467_p8), %v3065_v32  ;;  %2809 = vmatprep.subr.mxu1 (!%p467_p8), %v3065_v32  ;;  %s2697_s28 = sshll.u32 (!%p467_p8), %s473_s27, 7  ;;  %vm2491_vm3 = vcmask (!%p467_p8), 130048   ;;  %vm2493_vm4 = vcmask (!%p467_p8), 195584   ;;  %vm2495_vm5 = vcmask (!%p467_p8), 261120  }
  0x2b   : > { %2806 = vmatprep.mubr.msk.f32.mxu0 (!%p467_p8), %vm3066_vm1, %v3065_v32  ;;  %2811 = vmatprep.mubr.msk.f32.mxu1 (!%p467_p8), %vm3066_vm1, %v3065_v32  ;;  %s3206_s29 = scalar_lea.vmem (!%p467_p8), [#allocation3], %s2697_s28  ;;  %s3212_s21 = scalar_lea.vmem (!%p467_p8), [#allocation2], %s2697_s28 }
  0x2c   : > { %v592_v33 = vld [vmem:[%s3206_s29 + $0x60] sm:$0xff] (!%p467_p8)  ;;  %v593_v34 = vld [vmem:[%s3206_s29 + $0x68] sm:$0xff] (!%p467_p8)  ;;  %v594_v37 = vld [vmem:[%s3206_s29 + $0x70] sm:$0xff] (!%p467_p8)  ;;  %s3067_s19 = smov (!%p467_p8), 8   ;;  %s3068_s20 = smov (!%p467_p8), 16  }
  0x2d   : > { %2805 = vmatpush3.xpose.msk.msra.mxu0 (!%p467_p8), %vm600_vm0, %v592_v33  ;;  %2810 = vmatpush3.xpose.msk.msra.mxu1 (!%p467_p8), %vm600_vm0, %v593_v34  ;;  %v576_v35 = vld [vmem:[%s3212_s21 + $0x60] sm:$0xff] (!%p467_p8)  ;;  %v577_v36 = vld [vmem:[%s3212_s21 + $0x68] sm:$0xff] (!%p467_p8)  ;;  %v595_v38 = vld [vmem:[%s3206_s29 + $0x78] sm:$0xff] (!%p467_p8)  ;;  %s3069_s27 = smov (!%p467_p8), 24  }
  0x2e   : > { %2814 = vmatprep.subr.mxu0 (!%p467_p8), %v3065_v32  ;;  %2819 = vmatprep.subr.mxu1 (!%p467_p8), %v3065_v32  ;;  %v578_v39 = vld [vmem:[%s3212_s21 + $0x70] sm:$0xff] (!%p467_p8)  ;;  %v579_v40 = vld [vmem:[%s3212_s21 + $0x78] sm:$0xff] (!%p467_p8)  ;;  %v584_v41 = vld [vmem:[%s3206_s29 + $0x20] sm:$0xff] (!%p467_p8) }
  0x2f   : > { %v585_v42 = vld [vmem:[%s3206_s29 + $0x28] sm:$0xff] (!%p467_p8)  ;;  %v568_v43 = vld [vmem:[%s3212_s21 + $0x20] sm:$0xff] (!%p467_p8)  ;;  %v586_v45 = vld [vmem:[%s3206_s29 + $0x30] sm:$0xff] (!%p467_p8) }
  0x30   : > { %2807 = vmatmul.mubr.msk.f32.vlgmr.msra.gmra.mrb[0].mxu0 (!%p467_p8), %vm600_vm0, %v576_v35  ;;  %2812 = vmatmul.mubr.msk.f32.vlgmr.msra.gmra.mrb[0].mxu1 (!%p467_p8), %vm600_vm0, %v577_v36  ;;  %v569_v44 = vld [vmem:[%s3212_s21 + $0x28] sm:$0xff] (!%p467_p8)  ;;  %v587_v46 = vld [vmem:[%s3206_s29 + $0x38] sm:$0xff] (!%p467_p8)  ;;  %v570_v47 = vld [vmem:[%s3212_s21 + $0x30] sm:$0xff] (!%p467_p8) }
  0x31   : > { %2815 = vmatpush3.xpose.msk.msra.mxu0 %vm600_vm0, %v594_v37  ;;  %2820 = vmatpush3.xpose.msk.msra.mxu1 %vm600_vm0, %v595_v38  ;;  %v571_v48 = vld [vmem:[%s3212_s21 + $0x38] sm:$0xff]  ;;  %v588_v49 = vld [vmem:[%s3206_s29 + $0x40] sm:$0xff]  ;;  %v589_v50 = vld [vmem:[%s3206_s29 + $0x48] sm:$0xff]  ;;  %s3444_s23 = smov (!%p537_p9, %s3055_s23), 1 }
  0x32   : > { %2816 = vmatprep.mubr.msk.f32.mxu0 %vm3066_vm1, %v3065_v32  ;;  %2821 = vmatprep.mubr.msk.f32.mxu1 %vm3066_vm1, %v3065_v32  ;;  %v572_v51 = vld [vmem:[%s3212_s21 + $0x40] sm:$0xff]  ;;  %v590_v52 = vld [vmem:[%s3206_s29 + $0x50] sm:$0xff]  ;;  %v573_v53 = vld [vmem:[%s3212_s21 + $0x48] sm:$0xff]  ;;  %s2701_s11 = sshll.u32 %s3444_s23, 3  ;;  %s2751_s15 = sshll.u32 %s3444_s23, 5 }
  0x33   : > { %2824 = vmatprep.subr.mxu0 %v3065_v32  ;;  %2829 = vmatprep.subr.mxu1 %v3065_v32  ;;  %v591_v54 = vld [vmem:[%s3206_s29 + $0x58] sm:$0xff]  ;;  %v574_v55 = vld [vmem:[%s3212_s21 + $0x50] sm:$0xff]  ;;  %s3370_s14 = scalar_lea.vmem %s3435_s6, %s2701_s11  ;;  %s544_s18 = scalar_lea.vmem %s3431_s2, %s2751_s15 }
  0x34   : > { %2817 = vmatmul.mubr.msk.f32.vlgmr.msra.gmra.mrb[2].mxu0 %vm600_vm0, %v578_v39  ;;  %2822 = vmatmul.mubr.msk.f32.vlgmr.msra.gmra.mrb[2].mxu1 %vm600_vm0, %v579_v40  ;;  %v575_v56 = vld [vmem:[%s3212_s21 + $0x58] sm:$0xff]  ;;  %2501 = vst.msk [vmem:[%s3370_s14] sm:$0xff] %vm600_vm0, %v3065_v32 }
  0x35   : > { %2825 = vmatpush3.xpose.msk.msra.mxu0 %vm600_vm0, %v584_v41  ;;  %2830 = vmatpush3.xpose.msk.msra.mxu1 %vm600_vm0, %v585_v42 }
  0x36   : > { %2826 = vmatprep.mubr.msk.f32.mxu0 %vm3066_vm1, %v3065_v32  ;;  %2831 = vmatprep.mubr.msk.f32.mxu1 %vm3066_vm1, %v3065_v32 }
  0x37   : > { %2834 = vmatprep.subr.mxu0 %v3065_v32  ;;  %2839 = vmatprep.subr.mxu1 %v3065_v32 }
  0x38   : > { %2827 = vmatmul.mubr.msk.f32.vlgmr.msra.gmra.mrb[4].mxu0 %vm600_vm0, %v568_v43  ;;  %2832 = vmatmul.mubr.msk.f32.vlgmr.msra.gmra.mrb[4].mxu1 %vm600_vm0, %v569_v44 }
  0x39   : > { %2835 = vmatpush3.xpose.msk.msra.mxu0 %vm600_vm0, %v586_v45  ;;  %2840 = vmatpush3.xpose.msk.msra.mxu1 %vm600_vm0, %v587_v46 }
  0x3a   : > { %2836 = vmatprep.mubr.msk.f32.mxu0 %vm3066_vm1, %v3065_v32  ;;  %2841 = vmatprep.mubr.msk.f32.mxu1 %vm3066_vm1, %v3065_v32 }
  0x3b   : > { %2844 = vmatprep.subr.mxu0 %v3065_v32  ;;  %2849 = vmatprep.subr.mxu1 %v3065_v32 }
  0x3c   : > { %2837 = vmatmul.mubr.msk.f32.vlgmr.msra.gmra.mrb[6].mxu0 %vm600_vm0, %v570_v47  ;;  %2842 = vmatmul.mubr.msk.f32.vlgmr.msra.gmra.mrb[6].mxu1 %vm600_vm0, %v571_v48 }
  0x3d   : > { %2845 = vmatpush3.xpose.msk.msra.mxu0 %vm600_vm0, %v588_v49  ;;  %2846 = vmatprep.mubr.msk.f32.mxu0 %vm3066_vm1, %v3065_v32 }
  0x3e   : > { %2854 = vmatprep.subr.mxu0 %v3065_v32  ;;  %2850 = vmatpush3.xpose.msk.msra.mxu1 %vm600_vm0, %v589_v50 }
  0x3f   : > { %2851 = vmatprep.mubr.msk.f32.mxu1 %vm3066_vm1, %v3065_v32  ;;  %2859 = vmatprep.subr.mxu1 %v3065_v32 }
  0x40   : > { %2847 = vmatmul.mubr.msk.f32.vlgmr.msra.gmra.mrb[8].mxu0 %vm600_vm0, %v572_v51 }
  0x41   : > { %2855 = vmatpush3.xpose.msk.msra.mxu0 %vm600_vm0, %v590_v52  ;;  %2856 = vmatprep.mubr.msk.f32.mxu0 %vm3066_vm1, %v3065_v32 }
  0x42   : > { %2852 = vmatmul.mubr.msk.f32.vlgmr.msra.gmra.mrb[8].mxu1 %vm600_vm0, %v573_v53 }
  0x43   : > { %2860 = vmatpush3.xpose.msk.msra.mxu1 %vm600_vm0, %v591_v54  ;;  %2861 = vmatprep.mubr.msk.f32.mxu1 %vm3066_vm1, %v3065_v32 }
  0x44   : > { %2857 = vmatmul.mubr.msk.f32.vlgmr.msra.gmra.mrb[10].mxu0 %vm600_vm0, %v574_v55 }
  0x46   : > { %2862 = vmatmul.mubr.msk.f32.vlgmr.msra.gmra.mrb[10].mxu1 %vm600_vm0, %v575_v56 }
 0x103   : > { %v3288_v57 = vpop.f32.mrb[0].mxu0  ;;  %v3290_v58 = vpop.f32.mrb[0].mxu1 }
 0x104   : > { %v2808_v59 = vpop.f32.mrb[1].mxu0  ;;  %v2813_v60 = vpop.f32.mrb[1].mxu1 }
 0x107   : > { %v3292_v61 = vpop.f32.mrb[2].mxu0  ;;  %v3294_v62 = vpop.f32.mrb[2].mxu1 }
 0x108   : > { %v2818_v63 = vpop.f32.mrb[3].mxu0  ;;  %v2823_v0 = vpop.f32.mrb[3].mxu1 }
 0x10b   : > { %v977_v1 = vpop.f32.mrb[4].mxu0  ;;  %v1053_v2 = vpop.f32.mrb[4].mxu1 }
 0x10c   : > { %v2828_v3 = vpop.f32.mrb[5].mxu0  ;;  %v2833_v4 = vpop.f32.mrb[5].mxu1  ;;  %v1513_v5 = vsel %vm600_vm0, %v977_v1, -inf  ;;  %v1516_v11 = vsel %vm600_vm0, %v1053_v2, -inf }
 0x10d   : > { %1514 = vmax.xlane.f32.xlu0 %v1513_v5 }
 0x10f   : > { %v1129_v6 = vpop.f32.mrb[6].mxu0  ;;  %v1205_v7 = vpop.f32.mrb[6].mxu1 }
 0x110   : > { %v2838_v8 = vpop.f32.mrb[7].mxu0  ;;  %v2843_v9 = vpop.f32.mrb[7].mxu1  ;;  %v1522_v10 = vsel %vm600_vm0, %v1205_v7, -inf  ;;  %v1519_v14 = vsel %vm600_vm0, %v1129_v6, -inf }
 0x111   : > { %1523 = vmax.xlane.f32.xlu1 %v1522_v10  ;;  %1517 = vmax.xlane.f32.xlu0 %v1516_v11  ;;  %v1606_v8 = vld [vmem:[%s3433_s4] sm:$0xf] }
 0x112   : > { %2929 = vmatprep.subr.msk.bf16.mxu1 %vm1613_vm2, %v1606_v8  ;;  %v1673_v9 = vsel %vm1613_vm2, %v1606_v8, 0 }
 0x113   : > { %v1281_v12 = vpop.f32.mrb[8].mxu0  ;;  %2871 = vmatpush3.bf16.msra.mxu1 %v1673_v9 }
 0x114   : > { %v2848_v13 = vpop.f32.mrb[9].mxu0  ;;  %v1557_v15 = vsel %vm600_vm0, %v1281_v12, -inf }
 0x115   : > { %1520 = vmax.xlane.f32.xlu0 %v1519_v14  ;;  %1558 = vmax.xlane.f32.xlu1 %v1557_v15  ;;  %v1357_v16 = vpop.f32.mrb[8].mxu1 }
 0x116   : > { %v2853_v17 = vpop.f32.mrb[9].mxu1  ;;  %v1560_v18 = vsel %vm600_vm0, %v1357_v16, -inf }
 0x117   : > { %v1433_v19 = vpop.f32.mrb[10].mxu0 }
 0x118   : > { %v1563_v20 = vsel %vm600_vm0, %v1433_v19, -inf  ;;  %v2858_v21 = vpop.f32.mrb[11].mxu0 }
 0x119   : > { %1561 = vmax.xlane.f32.xlu1 %v1560_v18  ;;  %1564 = vmax.xlane.f32.xlu0 %v1563_v20  ;;  %v1509_v22 = vpop.f32.mrb[10].mxu1 }
 0x11a   : > { %v2863_v23 = vpop.f32.mrb[11].mxu1  ;;  %v1566_v24 = vsel %vm600_vm0, %v1509_v22, -inf }
 0x11d   : > { %1567 = vmax.xlane.f32.xlu1 %v1566_v24 }
 0x19a   : > { %v1515_v25 = vpop.xlane.xlu0 %1514 }
 0x19b   : > { %v1525_v26 = vsub.f32 %v977_v1, %v1515_v25 }
 0x19d   : > { %v1529_v27 = vmul.f32 1.442695, %v1525_v26 }
 0x19e   : > { %v1524_v28 = vpop.xlane.xlu1 %1523  ;;  %v1518_v29 = vpop.xlane.xlu0 %1517 }
 0x19f   : > { %2977 = vpow2.f32 %v1529_v27  ;;  %v1528_v30 = vsub.f32 %v1205_v7, %v1524_v28  ;;  %v1526_v31 = vsub.f32 %v1053_v2, %v1518_v29 }
 0x1a1   : > { %v1531_v33 = vmul.f32 1.442695, %v1526_v31  ;;  %v1535_v34 = vmul.f32 1.442695, %v1528_v30 }
 0x1a2   : > { %v1521_v35 = vpop.xlane.xlu0 %1520  ;;  %v1559_v36 = vpop.xlane.xlu1 %1558 }
 0x1a3   : > { %v1527_v37 = vsub.f32 %v1129_v6, %v1521_v35  ;;  %v1569_v38 = vsub.f32 %v1281_v12, %v1559_v36  ;;  %2979 = vpow2.f32 %v1531_v33  ;;  %v1605_v6 = vld [vmem:[%s3432_s3] sm:$0xf] }
 0x1a4   : > { %2981 = vpow2.f32 %v1535_v34  ;;  %2928 = vmatprep.subr.msk.bf16.mxu0 %vm1613_vm2, %v1605_v6  ;;  %v1615_v7 = vsel %vm1613_vm2, %v1605_v6, 0  ;;  %2931 = vmatprep.subr.msk.bf16.mxu1 %vm1613_vm2, %v1605_v6 }
 0x1a5   : > { %v1533_v39 = vmul.f32 1.442695, %v1527_v37  ;;  %v1573_v40 = vmul.f32 1.442695, %v1569_v38  ;;  %2865 = vmatpush3.bf16.msra.mxu0 %v1615_v7 }
 0x1a6   : > { %v1562_v41 = vpop.xlane.xlu1 %1561  ;;  %v1565_v42 = vpop.xlane.xlu0 %1564  ;;  %2930 = vmatprep.subr.msk.bf16.mxu0 %vm1613_vm2, %v1606_v8 }
 0x1a7   : > { %2983 = vpow2.f32 %v1533_v39  ;;  %v1570_v43 = vsub.f32 %v1357_v16, %v1562_v41  ;;  %v1571_v44 = vsub.f32 %v1433_v19, %v1565_v42  ;;  %v580_v39 = vld [vmem:[%s3206_s29] sm:$0xff]  ;;  %v582_v41 = vld [vmem:[%s3206_s29 + $0x10] sm:$0xff]  ;;  %v581_v42 = vld [vmem:[%s3206_s29 + $0x8] sm:$0xff] }
 0x1a8   : > { %2985 = vpow2.f32 %v1573_v40  ;;  %v564_v40 = vld [vmem:[%s3212_s21] sm:$0xff] }
 0x1a9   : > { %v2978_v45 = vpop.eup %2977  ;;  %v1575_v46 = vmul.f32 1.442695, %v1570_v43  ;;  %v1577_v47 = vmul.f32 1.442695, %v1571_v44  ;;  %v566_v43 = vld [vmem:[%s3212_s21 + $0x10] sm:$0xff]  ;;  %v565_v44 = vld [vmem:[%s3212_s21 + $0x8] sm:$0xff] }
 0x1aa   : > { %v1568_v48 = vpop.xlane.xlu1 %1567  ;;  %v1537_v49 = vsel %vm600_vm0, %v2978_v45, 0.0 }
 0x1ab   : > { %2987 = vpow2.f32 %v1575_v46  ;;  %v1572_v50 = vsub.f32 %v1509_v22, %v1568_v48  ;;  %1538 = vadd.xlane.f32.xlu0 %v1537_v49  ;;  %v567_v46 = vld [vmem:[%s3212_s21 + $0x18] sm:$0xff]  ;;  %s555_s21 = scalar_lea.vmem %s3434_s5, %s2701_s11 }
 0x1ac   : > { %2989 = vpow2.f32 %v1577_v47 }
 0x1ad   : > { %v1579_v51 = vmul.f32 1.442695, %v1572_v50  ;;  %v2980_v52 = vpop.eup %2979 }
 0x1ae   : > { %v1540_v53 = vsel %vm600_vm0, %v2980_v52, 0.0  ;;  %v2982_v54 = vpop.eup %2981 }
 0x1af   : > { %2991 = vpow2.f32 %v1579_v51  ;;  %1541 = vadd.xlane.f32.xlu1 %v1540_v53  ;;  %v1546_v60 = vsel %vm600_vm0, %v2982_v54, 0.0 }
 0x1b1   : > { %v2984_v55 = vpop.eup %2983 }
 0x1b2   : > { %v1543_v56 = vsel %vm600_vm0, %v2984_v55, 0.0  ;;  %v2986_v59 = vpop.eup %2985 }
 0x1b3   : > { %1544 = vadd.xlane.f32.xlu0 %v1543_v56  ;;  %1547 = vadd.xlane.f32.xlu1 %v1546_v60  ;;  %v1581_v1 = vsel %vm600_vm0, %v2986_v59, 0.0 }
 0x1b5   : > { %v2988_v63 = vpop.eup %2987 }
 0x1b6   : > { %v1584_v0 = vsel %vm600_vm0, %v2988_v63, 0.0  ;;  %v2990_v2 = vpop.eup %2989 }
 0x1b7   : > { %1582 = vadd.xlane.f32.xlu0 %v1581_v1  ;;  %1585 = vadd.xlane.f32.xlu1 %v1584_v0  ;;  %v1587_v5 = vsel %vm600_vm0, %v2990_v2, 0.0 }
 0x1b9   : > { %v2992_v3 = vpop.eup %2991 }
 0x1ba   : > { %v1590_v4 = vsel %vm600_vm0, %v2992_v3, 0.0 }
 0x1bb   : > { %1588 = vadd.xlane.f32.xlu0 %v1587_v5  ;;  %1591 = vadd.xlane.f32.xlu1 %v1590_v4 }
 0x238   : > { %v1539_v10 = vpop.xlane.xlu0 %1538 }
 0x239   : > { %2993 = vrcp.f32 %v1539_v10 }
 0x23c   : > { %v1542_v11 = vpop.xlane.xlu1 %1541 }
 0x23d   : > { %2995 = vrcp.f32 %v1542_v11 }
 0x240   : > { %v1545_v12 = vpop.xlane.xlu0 %1544  ;;  %v1548_v13 = vpop.xlane.xlu1 %1547 }
 0x241   : > { %2997 = vrcp.f32 %v1545_v12 }
 0x242   : > { %2999 = vrcp.f32 %v1548_v13 }
 0x243   : > { %v2994_v16 = vpop.eup %2993 }
 0x244   : > { %v1583_v14 = vpop.xlane.xlu0 %1582  ;;  %v1586_v15 = vpop.xlane.xlu1 %1585  ;;  %v1553_v20 = vmul.f32 %v2994_v16, %v2978_v45  ;;  %v583_v45 = vld [vmem:[%s3206_s29 + $0x18] sm:$0xff] }
 0x245   : > { %3001 = vrcp.f32 %v1583_v14 }
 0x246   : > { %3003 = vrcp.f32 %v1586_v15 }
 0x247   : > { %v2996_v17 = vpop.eup %2995 }
 0x248   : > { %v1589_v18 = vpop.xlane.xlu0 %1588  ;;  %v1592_v19 = vpop.xlane.xlu1 %1591  ;;  %v1554_v21 = vmul.f32 %v2996_v17, %v2980_v52 }
 0x249   : > { %3005 = vrcp.f32 %v1589_v18 }
 0x24a   : > { %3007 = vrcp.f32 %v1592_v19  ;;  %v1601_v23 = vpack.c.bf16 %v1554_v21, %v1553_v20 }
 0x24b   : > { %v2998_v22 = vpop.eup %2997 }
 0x24c   : > { %v3000_v24 = vpop.eup %2999  ;;  %v1555_v25 = vmul.f32 %v2998_v22, %v2984_v55  ;;  %2866 = vmatprep.mubr.msk.bf16.mxu0 %vm600_vm0, %v1601_v23 }
 0x24d   : > { %v1556_v26 = vmul.f32 %v3000_v24, %v2982_v54 }
 0x24f   : > { %v3002_v27 = vpop.eup %3001  ;;  %v1602_v28 = vpack.c.bf16 %v1556_v26, %v1555_v25 }
 0x250   : > { %v3004_v29 = vpop.eup %3003  ;;  %v1597_v30 = vmul.f32 %v3002_v27, %v2986_v59 }
 0x251   : > { %2867 = vmatmul.mubr.msk.bf16.vlgmr.msra.gmra.mrb[12].mxu0 %vm600_vm0, %v1602_v28  ;;  %v1598_v31 = vmul.f32 %v3004_v29, %v2988_v63 }
 0x252   : > { %2878 = vmatprep.mubr.msk.bf16.mxu0 %vm600_vm0, %v1601_v23  ;;  %2877 = vmatpush3.bf16.msra.mxu0 %v1673_v9 }
 0x253   : > { %v3006_v33 = vpop.eup %3005  ;;  %v1603_v34 = vpack.c.bf16 %v1598_v31, %v1597_v30  ;;  %2888 = vmatprep.subr.mxu0 %v3065_v32 }
 0x254   : > { %v3008_v35 = vpop.eup %3007  ;;  %v1599_v36 = vmul.f32 %v3006_v33, %v2990_v2 }
 0x255   : > { %v1600_v37 = vmul.f32 %v3008_v35, %v2992_v3  ;;  %2872 = vmatprep.mubr.msk.bf16.mxu1 %vm600_vm0, %v1603_v34  ;;  %v2502_v35 = vld [vmem:[%s3370_s14] sm:$0xff] }
 0x257   : > { %v1604_v38 = vpack.c.bf16 %v1600_v37, %v1599_v36 }
 0x259   : > { %2873 = vmatmul.mubr.msk.bf16.vlgmr.msra.gmra.mrb[12].mxu1 %vm600_vm0, %v1604_v38  ;;  %2879 = vmatmul.mubr.msk.bf16.vlgmr.msra.gmra.mrb[16].mxu0 %vm600_vm0, %v1602_v28 }
 0x25a   : > { %2883 = vmatpush3.bf16.msra.mxu1 %v1615_v7  ;;  %2884 = vmatprep.mubr.msk.bf16.mxu1 %vm600_vm0, %v1603_v34 }
 0x25b   : > { %2889 = vmatpush3.xpose.msk.msra.mxu0 %vm600_vm0, %v580_v39  ;;  %2890 = vmatprep.mubr.msk.f32.mxu0 %vm3066_vm1, %v3065_v32 }
 0x25c   : > { %2898 = vmatprep.subr.mxu0 %v3065_v32  ;;  %2893 = vmatprep.subr.mxu1 %v3065_v32 }
 0x261   : > { %2885 = vmatmul.mubr.msk.bf16.vlgmr.msra.gmra.mrb[16].mxu1 %vm600_vm0, %v1604_v38  ;;  %2891 = vmatmul.mubr.msk.f32.vlgmr.msra.gmra.mrb[20].mxu0 %vm600_vm0, %v564_v40 }
 0x262   : > { %2899 = vmatpush3.xpose.msk.msra.mxu0 %vm600_vm0, %v582_v41  ;;  %2900 = vmatprep.mubr.msk.f32.mxu0 %vm3066_vm1, %v3065_v32 }
 0x263   : > { %2894 = vmatpush3.xpose.msk.msra.mxu1 %vm600_vm0, %v581_v42  ;;  %2895 = vmatprep.mubr.msk.f32.mxu1 %vm3066_vm1, %v3065_v32 }
 0x264   : > { %2903 = vmatprep.subr.mxu1 %v3065_v32  ;;  %2908 = vmatprep.subr.mxu0 %v3065_v32 }
 0x265   : > { %2901 = vmatmul.mubr.msk.f32.vlgmr.msra.gmra.mrb[22].mxu0 %vm600_vm0, %v566_v43 }
 0x266   : > { %2910 = vmatprep.mubr.msk.f32.mxu0 %vm3066_vm1, %v3065_v32 }
 0x269   : > { %2896 = vmatmul.mubr.msk.f32.vlgmr.msra.gmra.mrb[20].mxu1 %vm600_vm0, %v565_v44 }
 0x26a   : > { %2904 = vmatpush3.xpose.msk.msra.mxu1 %vm600_vm0, %v583_v45  ;;  %2905 = vmatprep.mubr.msk.f32.mxu1 %vm3066_vm1, %v3065_v32 }
 0x26b   : > { %2913 = vmatprep.subr.mxu1 %v3065_v32 }
 0x26d   : > { %2906 = vmatmul.mubr.msk.f32.vlgmr.msra.gmra.mrb[22].mxu1 %vm600_vm0, %v567_v46 }
 0x26e   : > { %2915 = vmatprep.mubr.msk.f32.mxu1 %vm3066_vm1, %v3065_v32 }
 0x324   : > { %v2868_v47 = vpop.f32.mrb[12].mxu0 }
 0x325   : > { %v1651_v48 = vpop.f32.mrb[13].mxu0 }
 0x326   : > { %v2869_v49 = vpop.f32.mrb[14].mxu0 }
 0x327   : > { %v1654_v50 = vpop.f32.mrb[15].mxu0 }
 0x32c   : > { %v2874_v51 = vpop.f32.mrb[12].mxu1  ;;  %v2880_v52 = vpop.f32.mrb[16].mxu0 }
 0x32d   : > { %v1824_v53 = vmul.f32 %v2874_v51, %v2868_v47  ;;  %v1709_v54 = vpop.f32.mrb[13].mxu1  ;;  %v1758_v55 = vpop.f32.mrb[17].mxu0 }
 0x32e   : > { %v1822_v56 = vmul.f32 %v1709_v54, %v1651_v48  ;;  %v2875_v59 = vpop.f32.mrb[14].mxu1  ;;  %v2881_v60 = vpop.f32.mrb[18].mxu0 }
 0x32f   : > { %v1825_v63 = vmul.f32 %v2875_v59, %v2869_v49  ;;  %v1712_v0 = vpop.f32.mrb[15].mxu1  ;;  %v1761_v1 = vpop.f32.mrb[19].mxu0 }
 0x330   : > { %v1823_v2 = vmul.f32 %v1712_v0, %v1654_v50 }
 0x334   : > { %v2886_v3 = vpop.f32.mrb[16].mxu1  ;;  %v1910_v4 = vpop.f32.mrb[20].mxu0 }
 0x335   : > { %v1828_v5 = vmul.f32 %v2886_v3, %v2880_v52  ;;  %v1807_v6 = vpop.f32.mrb[17].mxu1  ;;  %v2892_v7 = vpop.f32.mrb[21].mxu0 }
 0x336   : > { %v1826_v8 = vmul.f32 %v1807_v6, %v1758_v55  ;;  %v2887_v9 = vpop.f32.mrb[18].mxu1 }
 0x337   : > { %v1832_v10 = vadd.f32 %v1828_v5, %v1824_v53  ;;  %v1829_v11 = vmul.f32 %v2887_v9, %v2881_v60  ;;  %v1810_v12 = vpop.f32.mrb[19].mxu1  ;;  %v598_v9 = vld [vmem:[%s544_s18 + $0x10] sm:$0xff] }
 0x338   : > { %v1830_v13 = vadd.f32 %v1826_v8, %v1822_v56  ;;  %v1827_v14 = vmul.f32 %v1810_v12, %v1761_v1  ;;  %v2062_v15 = vpop.f32.mrb[22].mxu0  ;;  %v596_v1 = vld [vmem:[%s544_s18] sm:$0xff]  ;;  %v599_v12 = vld [vmem:[%s544_s18 + $0x18] sm:$0xff] }
 0x339   : > { %v1833_v16 = vadd.f32 %v1829_v11, %v1825_v63  ;;  %v1836_v17 = vmul.f32 %v1832_v10, %v3292_v61  ;;  %v2902_v18 = vpop.f32.mrb[23].mxu0  ;;  %v2506_v61 = vsel %vm600_vm0, %v1832_v10, 0.0  ;;  %2909 = vmatpush3.msra.mxu0 %v596_v1 }
 0x33a   : > { %v1831_v19 = vadd.f32 %v1827_v14, %v1823_v2  ;;  %v1834_v20 = vmul.f32 %v1830_v13, %v3288_v57  ;;  %v2503_v23 = vsel %vm600_vm0, %v1830_v13, 0.0  ;;  %2918 = vmatprep.subr.mxu0 %v3065_v32  ;;  %v597_v2 = vld [vmem:[%s544_s18 + $0x8] sm:$0xff] }
 0x33b   : > { %v2063_v21 = vadd.f32 %v2062_v15, %v1836_v17  ;;  %v1837_v22 = vmul.f32 %v1833_v16, %v3294_v62  ;;  %v2508_v62 = vsel %vm600_vm0, %v1833_v16, 0.0  ;;  %2914 = vmatpush3.msra.mxu1 %v597_v2 }
 0x33c   : > { %v2504_v24 = vsel %vm600_vm0, %v1831_v19, 0.0  ;;  %v1911_v25 = vadd.f32 %v1910_v4, %v1834_v20  ;;  %v1835_v26 = vmul.f32 %v1831_v19, %v3290_v58  ;;  %v1986_v27 = vpop.f32.mrb[20].mxu1  ;;  %2923 = vmatprep.subr.mxu1 %v3065_v32 }
 0x33d   : > { %v2505_v28 = vadd.f32 %v2504_v24, %v2503_v23  ;;  %v2897_v29 = vpop.f32.mrb[21].mxu1  ;;  %v2148_v38 = vsel %vm600_vm0, %v2063_v21, -inf }
 0x33e   : > { %v1987_v30 = vadd.f32 %v1986_v27, %v1835_v26  ;;  %v2142_v31 = vsel %vm600_vm0, %v1911_v25, -inf }
 0x33f   : > { %v2507_v57 = vadd.f32 %v2506_v61, %v2505_v28  ;;  %2143 = vmax.xlane.f32.xlu0 %v2142_v31 }
 0x340   : > { %v2138_v33 = vpop.f32.mrb[22].mxu1  ;;  %v2145_v34 = vsel %vm600_vm0, %v1987_v30, -inf }
 0x341   : > { %v2509_v36 = vadd.f32 %v2508_v62, %v2507_v57  ;;  %v2139_v37 = vadd.f32 %v2138_v33, %v1837_v22  ;;  %2146 = vmax.xlane.f32.xlu1 %v2145_v34  ;;  %v2907_v58 = vpop.f32.mrb[23].mxu1 }
 0x343   : > { %2149 = vmax.xlane.f32.xlu0 %v2148_v38  ;;  %v2151_v39 = vsel %vm600_vm0, %v2139_v37, -inf  ;;  %v2510_v40 = vadd.f32 %v2509_v36, %v2502_v35 }
 0x345   : > { %2152 = vmax.xlane.f32.xlu1 %v2151_v39  ;;  %2511 = vst.msk [vmem:[%s3370_s14] sm:$0xff] %vm600_vm0, %v2510_v40 }
 0x3cc   : > { %v2144_v41 = vpop.xlane.xlu0 %2143 }
 0x3cd   : > { %v2154_v42 = vsub.f32 %v1911_v25, %v2144_v41 }
 0x3ce   : > { %v2147_v43 = vpop.xlane.xlu1 %2146 }
 0x3cf   : > { %v2158_v44 = vmul.f32 1.442695, %v2154_v42  ;;  %v2155_v45 = vsub.f32 %v1987_v30, %v2147_v43 }
 0x3d0   : > { %v2150_v46 = vpop.xlane.xlu0 %2149 }
 0x3d1   : > { %3009 = vpow2.f32 %v2158_v44  ;;  %v2160_v47 = vmul.f32 1.442695, %v2155_v45  ;;  %v2156_v48 = vsub.f32 %v2063_v21, %v2150_v46 }
 0x3d2   : > { %v2153_v49 = vpop.xlane.xlu1 %2152 }
 0x3d3   : > { %3011 = vpow2.f32 %v2160_v47  ;;  %v2162_v50 = vmul.f32 1.442695, %v2156_v48  ;;  %v2157_v51 = vsub.f32 %v2139_v37, %v2153_v49 }
 0x3d5   : > { %3013 = vpow2.f32 %v2162_v50  ;;  %v2164_v52 = vmul.f32 1.442695, %v2157_v51 }
 0x3d7   : > { %3015 = vpow2.f32 %v2164_v52 }
 0x3db   : > { %v3010_v53 = vpop.eup %3009 }
 0x3dc   : > { %v2166_v54 = vsel %vm600_vm0, %v3010_v53, 0.0 }
 0x3dd   : > { %v3012_v55 = vpop.eup %3011  ;;  %2167 = vadd.xlane.f32.xlu0 %v2166_v54 }
 0x3de   : > { %v2169_v56 = vsel %vm600_vm0, %v3012_v55, 0.0 }
 0x3df   : > { %v3014_v59 = vpop.eup %3013  ;;  %2170 = vadd.xlane.f32.xlu1 %v2169_v56 }
 0x3e0   : > { %v2172_v60 = vsel %vm600_vm0, %v3014_v59, 0.0 }
 0x3e1   : > { %v3016_v63 = vpop.eup %3015  ;;  %2173 = vadd.xlane.f32.xlu0 %v2172_v60 }
 0x3e2   : > { %v2175_v0 = vsel %vm600_vm0, %v3016_v63, 0.0 }
 0x3e3   : > { %2176 = vadd.xlane.f32.xlu1 %v2175_v0 }
 0x46a   : > { %v2168_v3 = vpop.xlane.xlu0 %2167 }
 0x46b   : > { %3017 = vrcp.f32 %v2168_v3 }
 0x46c   : > { %v2171_v4 = vpop.xlane.xlu1 %2170 }
 0x46d   : > { %3019 = vrcp.f32 %v2171_v4 }
 0x46e   : > { %v2174_v5 = vpop.xlane.xlu0 %2173 }
 0x46f   : > { %3021 = vrcp.f32 %v2174_v5 }
 0x470   : > { %v2177_v6 = vpop.xlane.xlu1 %2176 }
 0x471   : > { %3023 = vrcp.f32 %v2177_v6 }
 0x475   : > { %v3018_v7 = vpop.eup %3017 }
 0x476   : > { %v2182_v8 = vmul.f32 %v3018_v7, %v3010_v53 }
 0x477   : > { %v3020_v10 = vpop.eup %3019 }
 0x478   : > { %v2183_v11 = vmul.f32 %v3020_v10, %v3012_v55  ;;  %2911 = vmatmul.mubr.msk.f32.vlgmr.msra.gmra.mrb[24].mxu0 %vm600_vm0, %v2182_v8 }
 0x479   : > { %v3022_v13 = vpop.eup %3021  ;;  %2919 = vmatpush3.msra.mxu0 %v598_v9  ;;  %2920 = vmatprep.mubr.msk.f32.mxu0 %vm3066_vm1, %v3065_v32 }
 0x47a   : > { %v2184_v14 = vmul.f32 %v3022_v13, %v3014_v59  ;;  %2916 = vmatmul.mubr.msk.f32.vlgmr.msra.gmra.mrb[24].mxu1 %vm600_vm0, %v2183_v11 }
 0x47b   : > { %v3024_v15 = vpop.eup %3023  ;;  %2924 = vmatpush3.msra.mxu1 %v599_v12  ;;  %2925 = vmatprep.mubr.msk.f32.mxu1 %vm3066_vm1, %v3065_v32 }
 0x47c   : > { %v2185_v16 = vmul.f32 %v3024_v15, %v3016_v63  ;;  %2921 = vmatmul.mubr.msk.f32.vlgmr.msra.gmra.mrb[26].mxu0 %vm600_vm0, %v2184_v14 }
 0x47e   : > { %2926 = vmatmul.mubr.msk.f32.vlgmr.msra.gmra.mrb[26].mxu1 %vm600_vm0, %v2185_v16 }
 0x54b   : > { %v2255_v17 = vpop.f32.mrb[24].mxu0 }
 0x54c   : > { %v2912_v18 = vpop.f32.mrb[25].mxu0 }
 0x54d   : > { %v2328_v19 = vpop.f32.mrb[24].mxu1 }
 0x54e   : > { %v2917_v20 = vpop.f32.mrb[25].mxu1  ;;  %2479 = vrot.lane.b32.xlu0 %v2328_v19, %s3067_s19 }
 0x54f   : > { %v2401_v21 = vpop.f32.mrb[26].mxu0 }
 0x550   : > { %2483 = vrot.lane.b32.xlu1 %v2401_v21, %s3068_s20  ;;  %v2922_v22 = vpop.f32.mrb[27].mxu0 }
 0x551   : > { %v2474_v23 = vpop.f32.mrb[26].mxu1 }
 0x552   : > { %v2927_v24 = vpop.f32.mrb[27].mxu1 }
 0x554   : > { %2487 = vrot.lane.b32.xlu1 %v2474_v23, %s3069_s27 }
 0x5c0   : > { %v2480_v32 = vpop.permute.xlu0 %2479 }
 0x5c1   : > { %v2490_v26 = vsel %vm600_vm0, %v2255_v17, %v2480_v32 }
 0x5c2   : > { %v2484_v25 = vpop.permute.xlu1 %2483 }
 0x5c3   : > { %v2492_v27 = vsel %vm2491_vm3, %v2490_v26, %v2484_v25 }
 0x5c6   : > { %v2488_v28 = vpop.permute.xlu1 %2487 }
 0x5c7   : > { %v2494_v29 = vsel %vm2493_vm4, %v2492_v27, %v2488_v28 }
 0x5c8   : > { %2496 = vst.msk [vmem:[%s555_s21] sm:$0xff] %vm2495_vm5, %v2494_v29 }
 0x5c9 PF: > { %s17_s25 = sadd.s32 1, %s3063_s25   ;;  %s3437_s21 = smov %s3051_s22 }
 0x5ca   : > { %p14_p10 = scmp.ge.s32.totalorder %s17_s25, 4   ;;  %s3438_s22 = smov %s3144_s30 }
 0x5cb   : > { %s3439_s23 = smov %s3059_s24  ;;  %s3440_s24 = smov %s3442_s26 }
 0x5cc   :  { %16 = sbr.rel (!%p14_p10) target bundleno = 3 (0x3), region = 178 }

</bundles_post_ra>
